<compile_context>
chip_gen: v7x
topology: tpu7x:2x2x1
jax: 0.10.0
libtpu: 0.0.40
codegen_flags: <defaults>
</compile_context>

<pallas_src>
import functools

import numpy as np

import jax
import jax.numpy as jnp
from jax.experimental import pallas as pl
from jax.experimental.pallas import tpu as pltpu


_LEAK = 0.01  # nn.LeakyReLU default negative_slope


def calculate_input_size(latent_size, cnn_net_arch):
    size = latent_size
    for out_channels, kernel_size, stride, padding in reversed(cnn_net_arch):
        size = (size - 1) * stride - 2 * padding + kernel_size
    return size


def _round_up(x, m):
    return (x + m - 1) // m * m


# ----------------------------------------------------------------------------
# Fused stage kernel:
#   strided conv (patches from glue) -> LeakyReLU -> ResidualBlock
#   [-> final 3x3 conv -> sigmoid]   all in VMEM, one MXU matmul per conv.
# ----------------------------------------------------------------------------
def _stage_kernel(*refs, wo, include_final):
    """refs:
      p0_ref   (KK0*Cin, M)    bf16  im2col patches of the stage input
      mask_ref (9, M)          bf16  0/1 border masks for the 3x3 taps
      w0_ref   (C_pad, KK0*Cin) bf16, b0_ref (C_pad, 1) f32   strided conv
      w1_ref   (C_pad, 9*C_pad) bf16, b1_ref (C_pad, 1) f32   resblock conv1
      w2_ref   (C_pad, 9*C_pad) bf16, b2_ref (C_pad, 1) f32   resblock conv2
      [w3_ref  (L_pad, 9*C_pad) bf16, b3_ref (L_pad, 1) f32]  final conv
      o_ref    (C_pad or L_pad, M)  bf16 / f32
    """
    if include_final:
        (p0_ref, mask_ref, w0_ref, b0_ref, w1_ref, b1_ref, w2_ref, b2_ref,
         w3_ref, b3_ref, o_ref) = refs
    else:
        (p0_ref, mask_ref, w0_ref, b0_ref, w1_ref, b1_ref, w2_ref, b2_ref,
         o_ref) = refs

    masks = mask_ref[...]                                   # (9, M) bf16

    def leaky(v):
        return jnp.where(v >= 0, v, _LEAK * v)

    def patches_3x3(x_bf16):
        # x_bf16: (C_pad, M), M = n*ho*wo flattened (batch, row, col) on lanes.
        # tap (di, dj) value at position m is x[m + di*wo + dj] where valid,
        # 0 at spatial borders (mask).  Wrapped lanes are always masked.
        taps = []
        t = 0
        for di in (-1, 0, 1):
            for dj in (-1, 0, 1):
                off = di * wo + dj
                shifted = jnp.roll(x_bf16, -off, axis=1) if off else x_bf16
                taps.append(shifted * masks[t:t + 1, :])
                t += 1
        return jnp.concatenate(taps, axis=0)                # (9*C_pad, M)

    def conv3(x_f32, w_ref, b_ref):
        p = patches_3x3(x_f32.astype(jnp.bfloat16))
        return jnp.dot(w_ref[...], p,
                       preferred_element_type=jnp.float32) + b_ref[...]

    # Strided entry conv: one MXU matmul (taps folded into K by the wrapper).
    y = jnp.dot(w0_ref[...], p0_ref[...],
                preferred_element_type=jnp.float32) + b0_ref[...]
    y = leaky(y)

    # Residual block: intermediate stays in VMEM, residual is already resident.
    r = y
    y = leaky(conv3(y, w1_ref, b1_ref))
    y = leaky(conv3(y, w2_ref, b2_ref) + r)

    if include_final:
        y = conv3(y, w3_ref, b3_ref)
        y = 1.0 / (1.0 + jnp.exp(-y))                       # exact sigmoid

    o_ref[...] = y.astype(o_ref.dtype)


# ----------------------------------------------------------------------------
# XLA glue: im2col (strided entry conv only) + border masks for 3x3 taps.
# ----------------------------------------------------------------------------
def _im2col(x_cnhw, k, stride, padding):
    cin, n, h, w = x_cnhw.shape
    ho = (h + 2 * padding - k) // stride + 1
    wo = (w + 2 * padding - k) // stride + 1
    m = n * ho * wo
    xp = jnp.pad(x_cnhw,
                 ((0, 0), (0, 0), (padding, padding), (padding, padding)))
    taps = []
    for i in range(k):
        for j in range(k):
            sl = jax.lax.slice(
                xp, (0, 0, i, j),
                (cin, n, i + (ho - 1) * stride + 1, j + (wo - 1) * stride + 1),
                (1, 1, stride, stride))
            taps.append(sl.reshape(cin, m))
    return jnp.concatenate(taps, axis=0), ho, wo             # (k*k*cin, m)


def _tap_masks(n, ho, wo, m_pad):
    """0/1 masks (9, m_pad) for the in-kernel 3x3 tap formation."""
    m = n * ho * wo
    idx = np.arange(m)
    col = idx % wo
    row = (idx // wo) % ho
    masks = np.zeros((9, m_pad), np.float32)
    t = 0
    for di in (-1, 0, 1):
        for dj in (-1, 0, 1):
            valid = ((row + di >= 0) & (row + di < ho) &
                     (col + dj >= 0) & (col + dj < wo))
            masks[t, :m] = valid
            t += 1
    return jnp.asarray(masks, dtype=jnp.bfloat16)


# ----------------------------------------------------------------------------
# One fused stage = one pallas_call.
# ----------------------------------------------------------------------------
def _stage_pallas(x_cnhw, stage_params, *, cout, k, stride, padding,
                  include_final, latent_channels):
    cin, n, h, w = x_cnhw.shape
    patches, ho, wo = _im2col(x_cnhw, k, stride, padding)
    m = n * ho * wo
    m_pad = _round_up(m, 128)                 # lane-dense (unmasked) stores
    patches = jnp.pad(patches, ((0, 0), (0, m_pad - m))).astype(jnp.bfloat16)
    masks = _tap_masks(n, ho, wo, m_pad)

    if include_final:
        w0, b0, w1, b1, w2, b2, w3, b3 = stage_params
        inputs = [patches, masks, w0, b0, w1, b1, w2, b2, w3, b3]
        out_rows, out_ch, out_dtype = w3.shape[0], latent_channels, jnp.float32
    else:
        w0, b0, w1, b1, w2, b2 = stage_params
        inputs = [patches, masks, w0, b0, w1, b1, w2, b2]
        out_rows, out_ch, out_dtype = w2.shape[0], cout, jnp.bfloat16

    in_specs = [pl.BlockSpec(a.shape, lambda i: (0, 0)) for a in inputs]

    out = pl.pallas_call(
        functools.partial(_stage_kernel, wo=wo, include_final=include_final),
        out_shape=jax.ShapeDtypeStruct((out_rows, m_pad), out_dtype),
        grid=(1,),
        in_specs=in_specs,
        out_specs=pl.BlockSpec((out_rows, m_pad), lambda i: (0, 0)),
        compiler_params=pltpu.CompilerParams(
            dimension_semantics=("arbitrary",),
            # Working set here is <2 MiB; 32 MiB is safe on v5e/v6e/v7x alike.
            vmem_limit_bytes=32 * 1024 * 1024),
    )(*inputs)

    return out[:out_ch, :m].reshape(out_ch, n, ho, wo)       # (C, N, Ho, Wo)


# ----------------------------------------------------------------------------
# Encoder forward (activations kept in CNHW between stages).
# ----------------------------------------------------------------------------
def encoder_forward(x, params, *, cnn_net_arch, target_size, latent_channels):
    stages, final = params
    if x.ndim == 3:
        x = x[None]
    n, c = x.shape[:2]
    # torchvision T.Resize((t, t), antialias=True) equivalent (XLA glue).
    x = jax.image.resize(x, (n, c, target_size, target_size),
                         method="linear", antialias=True)
    x = jnp.transpose(x, (1, 0, 2, 3))                       # NCHW -> CNHW

    n_stages = len(cnn_net_arch)
    assert n_stages >= 1
    for si, (cout, k, s, p) in enumerate(cnn_net_arch):
        last = si == n_stages - 1
        sp = stages[si] + (final if last else ())
        x = _stage_pallas(x, sp, cout=cout, k=k, stride=s, padding=p,
                          include_final=last, latent_channels=latent_channels)
    return jnp.transpose(x, (1, 0, 2, 3))                    # CNHW -> NCHW


# ----------------------------------------------------------------------------
# Parameter init (nn.Conv2d-style) + one-time MXU prep.
# ----------------------------------------------------------------------------
def _conv_init(key, cout, cin, k):
    k1, k2 = jax.random.split(key)
    fan_in = cin * k * k
    bound = 1.0 / (fan_in ** 0.5)
    w = jax.random.uniform(k1, (cout, cin, k, k), jnp.float32, -bound, bound)
    b = jax.random.uniform(k2, (cout,), jnp.float32, -bound, bound)
    return w, b


def _prep_conv(w, b, *, cin_pad=None):
    """(Cout,Cin,KH,KW) -> (Cout_pad, KH*KW*Cin_pad) bf16, column order
    (tap-major, channel-minor); bias -> (Cout_pad, 1) f32.  Cout padded to a
    multiple of 16 (bf16 sublane packing)."""
    cout, cin, kh, kw = w.shape
    cout_pad = _round_up(cout, 16)
    if cin_pad is None:
        cin_pad = cin
    wt = jnp.transpose(w, (0, 2, 3, 1))                      # (cout, kh, kw, cin)
    wt = jnp.pad(wt, ((0, 0), (0, 0), (0, 0), (0, cin_pad - cin)))
    wt = wt.reshape(cout, kh * kw * cin_pad)
    wt = jnp.pad(wt, ((0, cout_pad - cout), (0, 0))).astype(jnp.bfloat16)
    bp = jnp.pad(b, (0, cout_pad - cout)).reshape(cout_pad, 1)
    return wt, bp.astype(jnp.float32)


def init_params(key, in_channels, cnn_net_arch, latent_channels):
    raw, stages = [], []
    cin = in_channels
    for (cout, k, s, p) in cnn_net_arch:
        key, k0, k1, k2 = jax.random.split(key, 4)
        w0, b0 = _conv_init(k0, cout, cin, k)
        w1, b1 = _conv_init(k1, cout, cout, 3)
        w2, b2 = _conv_init(k2, cout, cout, 3)
        raw.append((w0, b0))
        raw.append(((w1, b1), (w2, b2)))
        cpad = _round_up(cout, 16)
        pw0, pb0 = _prep_conv(w0, b0)                 # entry conv: glue patches
        pw1, pb1 = _prep_conv(w1, b1, cin_pad=cpad)   # in-kernel patches
        pw2, pb2 = _prep_conv(w2, b2, cin_pad=cpad)
        stages.append((pw0, pb0, pw1, pb1, pw2, pb2))
        cin = cout
    key, kf = jax.random.split(key)
    wf, bf = _conv_init(kf, latent_channels, cin, 3)
    raw.append((wf, bf))
    final = _prep_conv(wf, bf, cin_pad=_round_up(cin, 16))
    return (tuple(stages), final), raw


# ----------------------------------------------------------------------------
# Pure-JAX reference (lax.conv) for validation.
# ----------------------------------------------------------------------------
def encoder_reference(x, raw_params, *, cnn_net_arch, target_size,
                      latent_channels):
    if x.ndim == 3:
        x = x[None]
    n, c = x.shape[:2]
    x = jax.image.resize(x, (n, c, target_size, target_size),
                         method="linear", antialias=True)

    def conv(x, w, b, stride, padding):
        y = jax.lax.conv_general_dilated(
            x, w, (stride, stride), [(padding, padding)] * 2,
            dimension_numbers=("NCHW", "OIHW", "NCHW"))
        return y + b[None, :, None, None]

    def leaky(v):
        return jnp.where(v >= 0, v, _LEAK * v)

    i = 0
    for (cout, k, s, p) in cnn_net_arch:
        w, b = raw_params[i]; i += 1
        x = leaky(conv(x, w, b, s, p))
        (w1, b1), (w2, b2) = raw_params[i]; i += 1
        r = x
        x = leaky(conv(x, w1, b1, 1, 1))
        x = leaky(conv(x, w2, b2, 1, 1) + r)
    w, b = raw_params[i]
    return jax.nn.sigmoid(conv(x, w, b, 1, 1))


if __name__ == "__main__":
    # Small, self-consistent shapes: input (C=4, 16, 16), latent (3, 4, 4);
    # the arch halves spatial twice -> required input size 16.
    input_shape = (4, 16, 16)
    latent_shape = (3, 4, 4)
    cnn_net_arch = ((8, 4, 2, 1), (16, 4, 2, 1))
    target_size = calculate_input_size(
        min(latent_shape[1], latent_shape[2]), cnn_net_arch)
    assert target_size == 16

    key = jax.random.PRNGKey(0)
    kx, kp = jax.random.split(key)
    x = jax.random.uniform(kx, (2,) + input_shape, jnp.float32)
    params, raw_params = init_params(
        kp, input_shape[0], cnn_net_arch, latent_shape[0])

    fwd = jax.jit(functools.partial(
        encoder_forward, cnn_net_arch=cnn_net_arch, target_size=target_size,
        latent_channels=latent_shape[0]))
    out = jax.block_until_ready(fwd(x, params))

    assert out.shape == (2, latent_shape[0], latent_shape[1],
                         latent_shape[2]), out.shape
    assert bool(jnp.all(jnp.isfinite(out)))
    assert bool(jnp.all((out >= 0.0) & (out <= 1.0)))

    # Validate against a pure-JAX f32 reference (bf16 operands -> small drift).
    ref = encoder_reference(
        x, raw_params, cnn_net_arch=cnn_net_arch, target_size=target_size,
        latent_channels=latent_shape[0])
    max_err = float(jnp.max(jnp.abs(out - ref)))
    assert max_err < 5e-2, f"max |pallas - reference| = {max_err}"

    print("KERNEL_OK")
</pallas_src>

<mosaic_0001>
module attributes {stable_mosaic.version = 11 : i64} {
  func.func @_stage_kernel(%arg0: i32, %arg1: memref<64x128xbf16, #tpu.memory_space<vmem>>, %arg2: memref<9x128xbf16, #tpu.memory_space<vmem>>, %arg3: memref<16x64xbf16, #tpu.memory_space<vmem>>, %arg4: memref<16x1xf32, #tpu.memory_space<vmem>>, %arg5: memref<16x144xbf16, #tpu.memory_space<vmem>>, %arg6: memref<16x1xf32, #tpu.memory_space<vmem>>, %arg7: memref<16x144xbf16, #tpu.memory_space<vmem>>, %arg8: memref<16x1xf32, #tpu.memory_space<vmem>>, %arg9: memref<16x128xbf16, #tpu.memory_space<vmem>>) attributes {dimension_semantics = [#tpu.dimension_semantics<arbitrary>], iteration_bounds = array<i64: 1>, scalar_prefetch = 0 : i64, scratch_operands = 0 : i64, tpu.core_type = #tpu.core_type<tc>, window_params = [{pipeline_mode = #tpu.pipeline_mode<synchronous>, transform_indices = @transform_0, window_bounds = array<i64: 64, 128>}, {pipeline_mode = #tpu.pipeline_mode<synchronous>, transform_indices = @transform_1, window_bounds = array<i64: 9, 128>}, {pipeline_mode = #tpu.pipeline_mode<synchronous>, transform_indices = @transform_2, window_bounds = array<i64: 16, 64>}, {pipeline_mode = #tpu.pipeline_mode<synchronous>, transform_indices = @transform_3, window_bounds = array<i64: 16, 1>}, {pipeline_mode = #tpu.pipeline_mode<synchronous>, transform_indices = @transform_4, window_bounds = array<i64: 16, 144>}, {pipeline_mode = #tpu.pipeline_mode<synchronous>, transform_indices = @transform_5, window_bounds = array<i64: 16, 1>}, {pipeline_mode = #tpu.pipeline_mode<synchronous>, transform_indices = @transform_6, window_bounds = array<i64: 16, 144>}, {pipeline_mode = #tpu.pipeline_mode<synchronous>, transform_indices = @transform_7, window_bounds = array<i64: 16, 1>}, {pipeline_mode = #tpu.pipeline_mode<synchronous>, transform_indices = @transform_8, window_bounds = array<i64: 16, 128>}]} {
    %c0 = arith.constant 0 : index
    %c0_0 = arith.constant 0 : index
    %0 = vector.load %arg2[%c0, %c0_0] : memref<9x128xbf16, #tpu.memory_space<vmem>>, vector<9x128xbf16>
    %c0_1 = arith.constant 0 : index
    %c0_2 = arith.constant 0 : index
    %1 = vector.load %arg3[%c0_1, %c0_2] : memref<16x64xbf16, #tpu.memory_space<vmem>>, vector<16x64xbf16>
    %c0_3 = arith.constant 0 : index
    %c0_4 = arith.constant 0 : index
    %2 = vector.load %arg1[%c0_3, %c0_4] : memref<64x128xbf16, #tpu.memory_space<vmem>>, vector<64x128xbf16>
    %cst = arith.constant dense<0.000000e+00> : vector<16x128xf32>
    %3 = tpu.matmul %1, %2, %cst {dimension_numbers = #tpu.dot_dimension_numbers<[1], [0], [0], [1], [0, 0, 1, 1], [], []>} : vector<16x64xbf16>, vector<64x128xbf16>, vector<16x128xf32> -> vector<16x128xf32>
    %c0_5 = arith.constant 0 : index
    %c0_6 = arith.constant 0 : index
    %4 = vector.load %arg4[%c0_5, %c0_6] : memref<16x1xf32, #tpu.memory_space<vmem>>, vector<16x1xf32>
    %5 = vector.broadcast %4 : vector<16x1xf32> to vector<16x128xf32>
    %6 = arith.addf %3, %5 : vector<16x128xf32>
    %cst_7 = arith.constant 0.000000e+00 : f32
    %7 = vector.broadcast %cst_7 : f32 to vector<16x128xf32>
    %8 = arith.cmpf oge, %6, %7 : vector<16x128xf32>
    %cst_8 = arith.constant 0.00999999977 : f32
    %9 = vector.broadcast %cst_8 : f32 to vector<16x128xf32>
    %10 = arith.mulf %9, %6 : vector<16x128xf32>
    %11 = arith.select %8, %6, %10 : vector<16x128xi1>, vector<16x128xf32>
    %12 = arith.truncf %11 : vector<16x128xf32> to vector<16x128xbf16>
    %13 = vector.extract_strided_slice %12 {offsets = [0, 119], sizes = [16, 9], strides = [1, 1]} : vector<16x128xbf16> to vector<16x9xbf16>
    %14 = vector.extract_strided_slice %12 {offsets = [0, 0], sizes = [16, 119], strides = [1, 1]} : vector<16x128xbf16> to vector<16x119xbf16>
    %15 = tpu.concatenate %13, %14 in 1 : vector<16x9xbf16>, vector<16x119xbf16> -> vector<16x128xbf16>
    %16 = vector.extract_strided_slice %0 {offsets = [0, 0], sizes = [1, 128], strides = [1, 1]} : vector<9x128xbf16> to vector<1x128xbf16>
    %17 = vector.broadcast %16 : vector<1x128xbf16> to vector<16x128xbf16>
    %18 = arith.mulf %15, %17 : vector<16x128xbf16>
    %19 = vector.extract_strided_slice %12 {offsets = [0, 120], sizes = [16, 8], strides = [1, 1]} : vector<16x128xbf16> to vector<16x8xbf16>
    %20 = vector.extract_strided_slice %12 {offsets = [0, 0], sizes = [16, 120], strides = [1, 1]} : vector<16x128xbf16> to vector<16x120xbf16>
    %21 = tpu.concatenate %19, %20 in 1 : vector<16x8xbf16>, vector<16x120xbf16> -> vector<16x128xbf16>
    %22 = vector.extract_strided_slice %0 {offsets = [1, 0], sizes = [1, 128], strides = [1, 1]} : vector<9x128xbf16> to vector<1x128xbf16>
    %23 = vector.broadcast %22 : vector<1x128xbf16> to vector<16x128xbf16>
    %24 = arith.mulf %21, %23 : vector<16x128xbf16>
    %25 = vector.extract_strided_slice %12 {offsets = [0, 121], sizes = [16, 7], strides = [1, 1]} : vector<16x128xbf16> to vector<16x7xbf16>
    %26 = vector.extract_strided_slice %12 {offsets = [0, 0], sizes = [16, 121], strides = [1, 1]} : vector<16x128xbf16> to vector<16x121xbf16>
    %27 = tpu.concatenate %25, %26 in 1 : vector<16x7xbf16>, vector<16x121xbf16> -> vector<16x128xbf16>
    %28 = vector.extract_strided_slice %0 {offsets = [2, 0], sizes = [1, 128], strides = [1, 1]} : vector<9x128xbf16> to vector<1x128xbf16>
    %29 = vector.broadcast %28 : vector<1x128xbf16> to vector<16x128xbf16>
    %30 = arith.mulf %27, %29 : vector<16x128xbf16>
    %31 = vector.extract_strided_slice %12 {offsets = [0, 127], sizes = [16, 1], strides = [1, 1]} : vector<16x128xbf16> to vector<16x1xbf16>
    %32 = vector.extract_strided_slice %12 {offsets = [0, 0], sizes = [16, 127], strides = [1, 1]} : vector<16x128xbf16> to vector<16x127xbf16>
    %33 = tpu.concatenate %31, %32 in 1 : vector<16x1xbf16>, vector<16x127xbf16> -> vector<16x128xbf16>
    %34 = vector.extract_strided_slice %0 {offsets = [3, 0], sizes = [1, 128], strides = [1, 1]} : vector<9x128xbf16> to vector<1x128xbf16>
    %35 = vector.broadcast %34 : vector<1x128xbf16> to vector<16x128xbf16>
    %36 = arith.mulf %33, %35 : vector<16x128xbf16>
    %37 = vector.extract_strided_slice %0 {offsets = [4, 0], sizes = [1, 128], strides = [1, 1]} : vector<9x128xbf16> to vector<1x128xbf16>
    %38 = vector.broadcast %37 : vector<1x128xbf16> to vector<16x128xbf16>
    %39 = arith.mulf %12, %38 : vector<16x128xbf16>
    %40 = vector.extract_strided_slice %12 {offsets = [0, 1], sizes = [16, 127], strides = [1, 1]} : vector<16x128xbf16> to vector<16x127xbf16>
    %41 = vector.extract_strided_slice %12 {offsets = [0, 0], sizes = [16, 1], strides = [1, 1]} : vector<16x128xbf16> to vector<16x1xbf16>
    %42 = tpu.concatenate %40, %41 in 1 : vector<16x127xbf16>, vector<16x1xbf16> -> vector<16x128xbf16>
    %43 = vector.extract_strided_slice %0 {offsets = [5, 0], sizes = [1, 128], strides = [1, 1]} : vector<9x128xbf16> to vector<1x128xbf16>
    %44 = vector.broadcast %43 : vector<1x128xbf16> to vector<16x128xbf16>
    %45 = arith.mulf %42, %44 : vector<16x128xbf16>
    %46 = vector.extract_strided_slice %12 {offsets = [0, 7], sizes = [16, 121], strides = [1, 1]} : vector<16x128xbf16> to vector<16x121xbf16>
    %47 = vector.extract_strided_slice %12 {offsets = [0, 0], sizes = [16, 7], strides = [1, 1]} : vector<16x128xbf16> to vector<16x7xbf16>
    %48 = tpu.concatenate %46, %47 in 1 : vector<16x121xbf16>, vector<16x7xbf16> -> vector<16x128xbf16>
    %49 = vector.extract_strided_slice %0 {offsets = [6, 0], sizes = [1, 128], strides = [1, 1]} : vector<9x128xbf16> to vector<1x128xbf16>
    %50 = vector.broadcast %49 : vector<1x128xbf16> to vector<16x128xbf16>
    %51 = arith.mulf %48, %50 : vector<16x128xbf16>
    %52 = vector.extract_strided_slice %12 {offsets = [0, 8], sizes = [16, 120], strides = [1, 1]} : vector<16x128xbf16> to vector<16x120xbf16>
    %53 = vector.extract_strided_slice %12 {offsets = [0, 0], sizes = [16, 8], strides = [1, 1]} : vector<16x128xbf16> to vector<16x8xbf16>
    %54 = tpu.concatenate %52, %53 in 1 : vector<16x120xbf16>, vector<16x8xbf16> -> vector<16x128xbf16>
    %55 = vector.extract_strided_slice %0 {offsets = [7, 0], sizes = [1, 128], strides = [1, 1]} : vector<9x128xbf16> to vector<1x128xbf16>
    %56 = vector.broadcast %55 : vector<1x128xbf16> to vector<16x128xbf16>
    %57 = arith.mulf %54, %56 : vector<16x128xbf16>
    %58 = vector.extract_strided_slice %12 {offsets = [0, 9], sizes = [16, 119], strides = [1, 1]} : vector<16x128xbf16> to vector<16x119xbf16>
    %59 = vector.extract_strided_slice %12 {offsets = [0, 0], sizes = [16, 9], strides = [1, 1]} : vector<16x128xbf16> to vector<16x9xbf16>
    %60 = tpu.concatenate %58, %59 in 1 : vector<16x119xbf16>, vector<16x9xbf16> -> vector<16x128xbf16>
    %61 = vector.extract_strided_slice %0 {offsets = [8, 0], sizes = [1, 128], strides = [1, 1]} : vector<9x128xbf16> to vector<1x128xbf16>
    %62 = vector.broadcast %61 : vector<1x128xbf16> to vector<16x128xbf16>
    %63 = arith.mulf %60, %62 : vector<16x128xbf16>
    %64 = tpu.concatenate %18, %24, %30, %36, %39, %45, %51, %57, %63 in 0 : vector<16x128xbf16>, vector<16x128xbf16>, vector<16x128xbf16>, vector<16x128xbf16>, vector<16x128xbf16>, vector<16x128xbf16>, vector<16x128xbf16>, vector<16x128xbf16>, vector<16x128xbf16> -> vector<144x128xbf16>
    %c0_9 = arith.constant 0 : index
    %c0_10 = arith.constant 0 : index
    %65 = vector.load %arg5[%c0_9, %c0_10] : memref<16x144xbf16, #tpu.memory_space<vmem>>, vector<16x144xbf16>
    %cst_11 = arith.constant dense<0.000000e+00> : vector<16x128xf32>
    %66 = tpu.matmul %65, %64, %cst_11 {dimension_numbers = #tpu.dot_dimension_numbers<[1], [0], [0], [1], [0, 0, 1, 1], [], []>} : vector<16x144xbf16>, vector<144x128xbf16>, vector<16x128xf32> -> vector<16x128xf32>
    %c0_12 = arith.constant 0 : index
    %c0_13 = arith.constant 0 : index
    %67 = vector.load %arg6[%c0_12, %c0_13] : memref<16x1xf32, #tpu.memory_space<vmem>>, vector<16x1xf32>
    %68 = vector.broadcast %67 : vector<16x1xf32> to vector<16x128xf32>
    %69 = arith.addf %66, %68 : vector<16x128xf32>
    %cst_14 = arith.constant 0.000000e+00 : f32
    %70 = vector.broadcast %cst_14 : f32 to vector<16x128xf32>
    %71 = arith.cmpf oge, %69, %70 : vector<16x128xf32>
    %cst_15 = arith.constant 0.00999999977 : f32
    %72 = vector.broadcast %cst_15 : f32 to vector<16x128xf32>
    %73 = arith.mulf %72, %69 : vector<16x128xf32>
    %74 = arith.select %71, %69, %73 : vector<16x128xi1>, vector<16x128xf32>
    %75 = arith.truncf %74 : vector<16x128xf32> to vector<16x128xbf16>
    %76 = vector.extract_strided_slice %75 {offsets = [0, 119], sizes = [16, 9], strides = [1, 1]} : vector<16x128xbf16> to vector<16x9xbf16>
    %77 = vector.extract_strided_slice %75 {offsets = [0, 0], sizes = [16, 119], strides = [1, 1]} : vector<16x128xbf16> to vector<16x119xbf16>
    %78 = tpu.concatenate %76, %77 in 1 : vector<16x9xbf16>, vector<16x119xbf16> -> vector<16x128xbf16>
    %79 = vector.extract_strided_slice %0 {offsets = [0, 0], sizes = [1, 128], strides = [1, 1]} : vector<9x128xbf16> to vector<1x128xbf16>
    %80 = vector.broadcast %79 : vector<1x128xbf16> to vector<16x128xbf16>
    %81 = arith.mulf %78, %80 : vector<16x128xbf16>
    %82 = vector.extract_strided_slice %75 {offsets = [0, 120], sizes = [16, 8], strides = [1, 1]} : vector<16x128xbf16> to vector<16x8xbf16>
    %83 = vector.extract_strided_slice %75 {offsets = [0, 0], sizes = [16, 120], strides = [1, 1]} : vector<16x128xbf16> to vector<16x120xbf16>
    %84 = tpu.concatenate %82, %83 in 1 : vector<16x8xbf16>, vector<16x120xbf16> -> vector<16x128xbf16>
    %85 = vector.extract_strided_slice %0 {offsets = [1, 0], sizes = [1, 128], strides = [1, 1]} : vector<9x128xbf16> to vector<1x128xbf16>
    %86 = vector.broadcast %85 : vector<1x128xbf16> to vector<16x128xbf16>
    %87 = arith.mulf %84, %86 : vector<16x128xbf16>
    %88 = vector.extract_strided_slice %75 {offsets = [0, 121], sizes = [16, 7], strides = [1, 1]} : vector<16x128xbf16> to vector<16x7xbf16>
    %89 = vector.extract_strided_slice %75 {offsets = [0, 0], sizes = [16, 121], strides = [1, 1]} : vector<16x128xbf16> to vector<16x121xbf16>
    %90 = tpu.concatenate %88, %89 in 1 : vector<16x7xbf16>, vector<16x121xbf16> -> vector<16x128xbf16>
    %91 = vector.extract_strided_slice %0 {offsets = [2, 0], sizes = [1, 128], strides = [1, 1]} : vector<9x128xbf16> to vector<1x128xbf16>
    %92 = vector.broadcast %91 : vector<1x128xbf16> to vector<16x128xbf16>
    %93 = arith.mulf %90, %92 : vector<16x128xbf16>
    %94 = vector.extract_strided_slice %75 {offsets = [0, 127], sizes = [16, 1], strides = [1, 1]} : vector<16x128xbf16> to vector<16x1xbf16>
    %95 = vector.extract_strided_slice %75 {offsets = [0, 0], sizes = [16, 127], strides = [1, 1]} : vector<16x128xbf16> to vector<16x127xbf16>
    %96 = tpu.concatenate %94, %95 in 1 : vector<16x1xbf16>, vector<16x127xbf16> -> vector<16x128xbf16>
    %97 = vector.extract_strided_slice %0 {offsets = [3, 0], sizes = [1, 128], strides = [1, 1]} : vector<9x128xbf16> to vector<1x128xbf16>
    %98 = vector.broadcast %97 : vector<1x128xbf16> to vector<16x128xbf16>
    %99 = arith.mulf %96, %98 : vector<16x128xbf16>
    %100 = vector.extract_strided_slice %0 {offsets = [4, 0], sizes = [1, 128], strides = [1, 1]} : vector<9x128xbf16> to vector<1x128xbf16>
    %101 = vector.broadcast %100 : vector<1x128xbf16> to vector<16x128xbf16>
    %102 = arith.mulf %75, %101 : vector<16x128xbf16>
    %103 = vector.extract_strided_slice %75 {offsets = [0, 1], sizes = [16, 127], strides = [1, 1]} : vector<16x128xbf16> to vector<16x127xbf16>
    %104 = vector.extract_strided_slice %75 {offsets = [0, 0], sizes = [16, 1], strides = [1, 1]} : vector<16x128xbf16> to vector<16x1xbf16>
    %105 = tpu.concatenate %103, %104 in 1 : vector<16x127xbf16>, vector<16x1xbf16> -> vector<16x128xbf16>
    %106 = vector.extract_strided_slice %0 {offsets = [5, 0], sizes = [1, 128], strides = [1, 1]} : vector<9x128xbf16> to vector<1x128xbf16>
    %107 = vector.broadcast %106 : vector<1x128xbf16> to vector<16x128xbf16>
    %108 = arith.mulf %105, %107 : vector<16x128xbf16>
    %109 = vector.extract_strided_slice %75 {offsets = [0, 7], sizes = [16, 121], strides = [1, 1]} : vector<16x128xbf16> to vector<16x121xbf16>
    %110 = vector.extract_strided_slice %75 {offsets = [0, 0], sizes = [16, 7], strides = [1, 1]} : vector<16x128xbf16> to vector<16x7xbf16>
    %111 = tpu.concatenate %109, %110 in 1 : vector<16x121xbf16>, vector<16x7xbf16> -> vector<16x128xbf16>
    %112 = vector.extract_strided_slice %0 {offsets = [6, 0], sizes = [1, 128], strides = [1, 1]} : vector<9x128xbf16> to vector<1x128xbf16>
    %113 = vector.broadcast %112 : vector<1x128xbf16> to vector<16x128xbf16>
    %114 = arith.mulf %111, %113 : vector<16x128xbf16>
    %115 = vector.extract_strided_slice %75 {offsets = [0, 8], sizes = [16, 120], strides = [1, 1]} : vector<16x128xbf16> to vector<16x120xbf16>
    %116 = vector.extract_strided_slice %75 {offsets = [0, 0], sizes = [16, 8], strides = [1, 1]} : vector<16x128xbf16> to vector<16x8xbf16>
    %117 = tpu.concatenate %115, %116 in 1 : vector<16x120xbf16>, vector<16x8xbf16> -> vector<16x128xbf16>
    %118 = vector.extract_strided_slice %0 {offsets = [7, 0], sizes = [1, 128], strides = [1, 1]} : vector<9x128xbf16> to vector<1x128xbf16>
    %119 = vector.broadcast %118 : vector<1x128xbf16> to vector<16x128xbf16>
    %120 = arith.mulf %117, %119 : vector<16x128xbf16>
    %121 = vector.extract_strided_slice %75 {offsets = [0, 9], sizes = [16, 119], strides = [1, 1]} : vector<16x128xbf16> to vector<16x119xbf16>
    %122 = vector.extract_strided_slice %75 {offsets = [0, 0], sizes = [16, 9], strides = [1, 1]} : vector<16x128xbf16> to vector<16x9xbf16>
    %123 = tpu.concatenate %121, %122 in 1 : vector<16x119xbf16>, vector<16x9xbf16> -> vector<16x128xbf16>
    %124 = vector.extract_strided_slice %0 {offsets = [8, 0], sizes = [1, 128], strides = [1, 1]} : vector<9x128xbf16> to vector<1x128xbf16>
    %125 = vector.broadcast %124 : vector<1x128xbf16> to vector<16x128xbf16>
    %126 = arith.mulf %123, %125 : vector<16x128xbf16>
    %127 = tpu.concatenate %81, %87, %93, %99, %102, %108, %114, %120, %126 in 0 : vector<16x128xbf16>, vector<16x128xbf16>, vector<16x128xbf16>, vector<16x128xbf16>, vector<16x128xbf16>, vector<16x128xbf16>, vector<16x128xbf16>, vector<16x128xbf16>, vector<16x128xbf16> -> vector<144x128xbf16>
    %c0_16 = arith.constant 0 : index
    %c0_17 = arith.constant 0 : index
    %128 = vector.load %arg7[%c0_16, %c0_17] : memref<16x144xbf16, #tpu.memory_space<vmem>>, vector<16x144xbf16>
    %cst_18 = arith.constant dense<0.000000e+00> : vector<16x128xf32>
    %129 = tpu.matmul %128, %127, %cst_18 {dimension_numbers = #tpu.dot_dimension_numbers<[1], [0], [0], [1], [0, 0, 1, 1], [], []>} : vector<16x144xbf16>, vector<144x128xbf16>, vector<16x128xf32> -> vector<16x128xf32>
    %c0_19 = arith.constant 0 : index
    %c0_20 = arith.constant 0 : index
    %130 = vector.load %arg8[%c0_19, %c0_20] : memref<16x1xf32, #tpu.memory_space<vmem>>, vector<16x1xf32>
    %131 = vector.broadcast %130 : vector<16x1xf32> to vector<16x128xf32>
    %132 = arith.addf %129, %131 : vector<16x128xf32>
    %133 = arith.addf %132, %11 : vector<16x128xf32>
    %cst_21 = arith.constant 0.000000e+00 : f32
    %134 = vector.broadcast %cst_21 : f32 to vector<16x128xf32>
    %135 = arith.cmpf oge, %133, %134 : vector<16x128xf32>
    %cst_22 = arith.constant 0.00999999977 : f32
    %136 = vector.broadcast %cst_22 : f32 to vector<16x128xf32>
    %137 = arith.mulf %136, %133 : vector<16x128xf32>
    %138 = arith.select %135, %133, %137 : vector<16x128xi1>, vector<16x128xf32>
    %139 = arith.truncf %138 : vector<16x128xf32> to vector<16x128xbf16>
    %c0_23 = arith.constant 0 : index
    %c0_24 = arith.constant 0 : index
    %140 = vector.load %arg9[%c0_23, %c0_24] : memref<16x128xbf16, #tpu.memory_space<vmem>>, vector<16x128xbf16>
    tpu.vector_store %arg9[%c0_23, %c0_24], %139 {strides = array<i32>} : memref<16x128xbf16, #tpu.memory_space<vmem>>, vector<16x128xbf16>,
    return
  }
  func.func @transform_0(%arg0: i32) -> (i32, i32) {
    %c0_i32 = arith.constant 0 : i32
    %c0_i32_0 = arith.constant 0 : i32
    %c0_i32_1 = arith.constant 0 : i32
    return %c0_i32, %c0_i32_0 : i32, i32
  }
  func.func @transform_1(%arg0: i32) -> (i32, i32) {
    %c0_i32 = arith.constant 0 : i32
    %c0_i32_0 = arith.constant 0 : i32
    %c0_i32_1 = arith.constant 0 : i32
    return %c0_i32, %c0_i32_0 : i32, i32
  }
  func.func @transform_2(%arg0: i32) -> (i32, i32) {
    %c0_i32 = arith.constant 0 : i32
    %c0_i32_0 = arith.constant 0 : i32
    %c0_i32_1 = arith.constant 0 : i32
    return %c0_i32, %c0_i32_0 : i32, i32
  }
  func.func @transform_3(%arg0: i32) -> (i32, i32) {
    %c0_i32 = arith.constant 0 : i32
    %c0_i32_0 = arith.constant 0 : i32
    %c0_i32_1 = arith.constant 0 : i32
    return %c0_i32, %c0_i32_0 : i32, i32
  }
  func.func @transform_4(%arg0: i32) -> (i32, i32) {
    %c0_i32 = arith.constant 0 : i32
    %c0_i32_0 = arith.constant 0 : i32
    %c0_i32_1 = arith.constant 0 : i32
    return %c0_i32, %c0_i32_0 : i32, i32
  }
  func.func @transform_5(%arg0: i32) -> (i32, i32) {
    %c0_i32 = arith.constant 0 : i32
    %c0_i32_0 = arith.constant 0 : i32
    %c0_i32_1 = arith.constant 0 : i32
    return %c0_i32, %c0_i32_0 : i32, i32
  }
  func.func @transform_6(%arg0: i32) -> (i32, i32) {
    %c0_i32 = arith.constant 0 : i32
    %c0_i32_0 = arith.constant 0 : i32
    %c0_i32_1 = arith.constant 0 : i32
    return %c0_i32, %c0_i32_0 : i32, i32
  }
  func.func @transform_7(%arg0: i32) -> (i32, i32) {
    %c0_i32 = arith.constant 0 : i32
    %c0_i32_0 = arith.constant 0 : i32
    %c0_i32_1 = arith.constant 0 : i32
    return %c0_i32, %c0_i32_0 : i32, i32
  }
  func.func @transform_8(%arg0: i32) -> (i32, i32) {
    %c0_i32 = arith.constant 0 : i32
    %c0_i32_0 = arith.constant 0 : i32
    %c0_i32_1 = arith.constant 0 : i32
    return %c0_i32, %c0_i32_0 : i32, i32
  }
}

module attributes {stable_mosaic.version = 11 : i64} {
  func.func @_stage_kernel(%arg0: i32, %arg1: memref<128x128xbf16, #tpu.memory_space<vmem>>, %arg2: memref<9x128xbf16, #tpu.memory_space<vmem>>, %arg3: memref<16x128xbf16, #tpu.memory_space<vmem>>, %arg4: memref<16x1xf32, #tpu.memory_space<vmem>>, %arg5: memref<16x144xbf16, #tpu.memory_space<vmem>>, %arg6: memref<16x1xf32, #tpu.memory_space<vmem>>, %arg7: memref<16x144xbf16, #tpu.memory_space<vmem>>, %arg8: memref<16x1xf32, #tpu.memory_space<vmem>>, %arg9: memref<16x144xbf16, #tpu.memory_space<vmem>>, %arg10: memref<16x1xf32, #tpu.memory_space<vmem>>, %arg11: memref<16x128xf32, #tpu.memory_space<vmem>>) attributes {dimension_semantics = [#tpu.dimension_semantics<arbitrary>], iteration_bounds = array<i64: 1>, scalar_prefetch = 0 : i64, scratch_operands = 0 : i64, tpu.core_type = #tpu.core_type<tc>, window_params = [{pipeline_mode = #tpu.pipeline_mode<synchronous>, transform_indices = @transform_0, window_bounds = array<i64: 128, 128>}, {pipeline_mode = #tpu.pipeline_mode<synchronous>, transform_indices = @transform_1, window_bounds = array<i64: 9, 128>}, {pipeline_mode = #tpu.pipeline_mode<synchronous>, transform_indices = @transform_2, window_bounds = array<i64: 16, 128>}, {pipeline_mode = #tpu.pipeline_mode<synchronous>, transform_indices = @transform_3, window_bounds = array<i64: 16, 1>}, {pipeline_mode = #tpu.pipeline_mode<synchronous>, transform_indices = @transform_4, window_bounds = array<i64: 16, 144>}, {pipeline_mode = #tpu.pipeline_mode<synchronous>, transform_indices = @transform_5, window_bounds = array<i64: 16, 1>}, {pipeline_mode = #tpu.pipeline_mode<synchronous>, transform_indices = @transform_6, window_bounds = array<i64: 16, 144>}, {pipeline_mode = #tpu.pipeline_mode<synchronous>, transform_indices = @transform_7, window_bounds = array<i64: 16, 1>}, {pipeline_mode = #tpu.pipeline_mode<synchronous>, transform_indices = @transform_8, window_bounds = array<i64: 16, 144>}, {pipeline_mode = #tpu.pipeline_mode<synchronous>, transform_indices = @transform_9, window_bounds = array<i64: 16, 1>}, {pipeline_mode = #tpu.pipeline_mode<synchronous>, transform_indices = @transform_10, window_bounds = array<i64: 16, 128>}]} {
    %c0 = arith.constant 0 : index
    %c0_0 = arith.constant 0 : index
    %0 = vector.load %arg2[%c0, %c0_0] : memref<9x128xbf16, #tpu.memory_space<vmem>>, vector<9x128xbf16>
    %c0_1 = arith.constant 0 : index
    %c0_2 = arith.constant 0 : index
    %1 = vector.load %arg3[%c0_1, %c0_2] : memref<16x128xbf16, #tpu.memory_space<vmem>>, vector<16x128xbf16>
    %c0_3 = arith.constant 0 : index
    %c0_4 = arith.constant 0 : index
    %2 = vector.load %arg1[%c0_3, %c0_4] : memref<128x128xbf16, #tpu.memory_space<vmem>>, vector<128x128xbf16>
    %cst = arith.constant dense<0.000000e+00> : vector<16x128xf32>
    %3 = tpu.matmul %1, %2, %cst {dimension_numbers = #tpu.dot_dimension_numbers<[1], [0], [0], [1], [0, 0, 1, 1], [], []>} : vector<16x128xbf16>, vector<128x128xbf16>, vector<16x128xf32> -> vector<16x128xf32>
    %c0_5 = arith.constant 0 : index
    %c0_6 = arith.constant 0 : index
    %4 = vector.load %arg4[%c0_5, %c0_6] : memref<16x1xf32, #tpu.memory_space<vmem>>, vector<16x1xf32>
    %5 = vector.broadcast %4 : vector<16x1xf32> to vector<16x128xf32>
    %6 = arith.addf %3, %5 : vector<16x128xf32>
    %cst_7 = arith.constant 0.000000e+00 : f32
    %7 = vector.broadcast %cst_7 : f32 to vector<16x128xf32>
    %8 = arith.cmpf oge, %6, %7 : vector<16x128xf32>
    %cst_8 = arith.constant 0.00999999977 : f32
    %9 = vector.broadcast %cst_8 : f32 to vector<16x128xf32>
    %10 = arith.mulf %9, %6 : vector<16x128xf32>
    %11 = arith.select %8, %6, %10 : vector<16x128xi1>, vector<16x128xf32>
    %12 = arith.truncf %11 : vector<16x128xf32> to vector<16x128xbf16>
    %13 = vector.extract_strided_slice %12 {offsets = [0, 123], sizes = [16, 5], strides = [1, 1]} : vector<16x128xbf16> to vector<16x5xbf16>
    %14 = vector.extract_strided_slice %12 {offsets = [0, 0], sizes = [16, 123], strides = [1, 1]} : vector<16x128xbf16> to vector<16x123xbf16>
    %15 = tpu.concatenate %13, %14 in 1 : vector<16x5xbf16>, vector<16x123xbf16> -> vector<16x128xbf16>
    %16 = vector.extract_strided_slice %0 {offsets = [0, 0], sizes = [1, 128], strides = [1, 1]} : vector<9x128xbf16> to vector<1x128xbf16>
    %17 = vector.broadcast %16 : vector<1x128xbf16> to vector<16x128xbf16>
    %18 = arith.mulf %15, %17 : vector<16x128xbf16>
    %19 = vector.extract_strided_slice %12 {offsets = [0, 124], sizes = [16, 4], strides = [1, 1]} : vector<16x128xbf16> to vector<16x4xbf16>
    %20 = vector.extract_strided_slice %12 {offsets = [0, 0], sizes = [16, 124], strides = [1, 1]} : vector<16x128xbf16> to vector<16x124xbf16>
    %21 = tpu.concatenate %19, %20 in 1 : vector<16x4xbf16>, vector<16x124xbf16> -> vector<16x128xbf16>
    %22 = vector.extract_strided_slice %0 {offsets = [1, 0], sizes = [1, 128], strides = [1, 1]} : vector<9x128xbf16> to vector<1x128xbf16>
    %23 = vector.broadcast %22 : vector<1x128xbf16> to vector<16x128xbf16>
    %24 = arith.mulf %21, %23 : vector<16x128xbf16>
    %25 = vector.extract_strided_slice %12 {offsets = [0, 125], sizes = [16, 3], strides = [1, 1]} : vector<16x128xbf16> to vector<16x3xbf16>
    %26 = vector.extract_strided_slice %12 {offsets = [0, 0], sizes = [16, 125], strides = [1, 1]} : vector<16x128xbf16> to vector<16x125xbf16>
    %27 = tpu.concatenate %25, %26 in 1 : vector<16x3xbf16>, vector<16x125xbf16> -> vector<16x128xbf16>
    %28 = vector.extract_strided_slice %0 {offsets = [2, 0], sizes = [1, 128], strides = [1, 1]} : vector<9x128xbf16> to vector<1x128xbf16>
    %29 = vector.broadcast %28 : vector<1x128xbf16> to vector<16x128xbf16>
    %30 = arith.mulf %27, %29 : vector<16x128xbf16>
    %31 = vector.extract_strided_slice %12 {offsets = [0, 127], sizes = [16, 1], strides = [1, 1]} : vector<16x128xbf16> to vector<16x1xbf16>
    %32 = vector.extract_strided_slice %12 {offsets = [0, 0], sizes = [16, 127], strides = [1, 1]} : vector<16x128xbf16> to vector<16x127xbf16>
    %33 = tpu.concatenate %31, %32 in 1 : vector<16x1xbf16>, vector<16x127xbf16> -> vector<16x128xbf16>
    %34 = vector.extract_strided_slice %0 {offsets = [3, 0], sizes = [1, 128], strides = [1, 1]} : vector<9x128xbf16> to vector<1x128xbf16>
    %35 = vector.broadcast %34 : vector<1x128xbf16> to vector<16x128xbf16>
    %36 = arith.mulf %33, %35 : vector<16x128xbf16>
    %37 = vector.extract_strided_slice %0 {offsets = [4, 0], sizes = [1, 128], strides = [1, 1]} : vector<9x128xbf16> to vector<1x128xbf16>
    %38 = vector.broadcast %37 : vector<1x128xbf16> to vector<16x128xbf16>
    %39 = arith.mulf %12, %38 : vector<16x128xbf16>
    %40 = vector.extract_strided_slice %12 {offsets = [0, 1], sizes = [16, 127], strides = [1, 1]} : vector<16x128xbf16> to vector<16x127xbf16>
    %41 = vector.extract_strided_slice %12 {offsets = [0, 0], sizes = [16, 1], strides = [1, 1]} : vector<16x128xbf16> to vector<16x1xbf16>
    %42 = tpu.concatenate %40, %41 in 1 : vector<16x127xbf16>, vector<16x1xbf16> -> vector<16x128xbf16>
    %43 = vector.extract_strided_slice %0 {offsets = [5, 0], sizes = [1, 128], strides = [1, 1]} : vector<9x128xbf16> to vector<1x128xbf16>
    %44 = vector.broadcast %43 : vector<1x128xbf16> to vector<16x128xbf16>
    %45 = arith.mulf %42, %44 : vector<16x128xbf16>
    %46 = vector.extract_strided_slice %12 {offsets = [0, 3], sizes = [16, 125], strides = [1, 1]} : vector<16x128xbf16> to vector<16x125xbf16>
    %47 = vector.extract_strided_slice %12 {offsets = [0, 0], sizes = [16, 3], strides = [1, 1]} : vector<16x128xbf16> to vector<16x3xbf16>
    %48 = tpu.concatenate %46, %47 in 1 : vector<16x125xbf16>, vector<16x3xbf16> -> vector<16x128xbf16>
    %49 = vector.extract_strided_slice %0 {offsets = [6, 0], sizes = [1, 128], strides = [1, 1]} : vector<9x128xbf16> to vector<1x128xbf16>
    %50 = vector.broadcast %49 : vector<1x128xbf16> to vector<16x128xbf16>
    %51 = arith.mulf %48, %50 : vector<16x128xbf16>
    %52 = vector.extract_strided_slice %12 {offsets = [0, 4], sizes = [16, 124], strides = [1, 1]} : vector<16x128xbf16> to vector<16x124xbf16>
    %53 = vector.extract_strided_slice %12 {offsets = [0, 0], sizes = [16, 4], strides = [1, 1]} : vector<16x128xbf16> to vector<16x4xbf16>
    %54 = tpu.concatenate %52, %53 in 1 : vector<16x124xbf16>, vector<16x4xbf16> -> vector<16x128xbf16>
    %55 = vector.extract_strided_slice %0 {offsets = [7, 0], sizes = [1, 128], strides = [1, 1]} : vector<9x128xbf16> to vector<1x128xbf16>
    %56 = vector.broadcast %55 : vector<1x128xbf16> to vector<16x128xbf16>
    %57 = arith.mulf %54, %56 : vector<16x128xbf16>
    %58 = vector.extract_strided_slice %12 {offsets = [0, 5], sizes = [16, 123], strides = [1, 1]} : vector<16x128xbf16> to vector<16x123xbf16>
    %59 = vector.extract_strided_slice %12 {offsets = [0, 0], sizes = [16, 5], strides = [1, 1]} : vector<16x128xbf16> to vector<16x5xbf16>
    %60 = tpu.concatenate %58, %59 in 1 : vector<16x123xbf16>, vector<16x5xbf16> -> vector<16x128xbf16>
    %61 = vector.extract_strided_slice %0 {offsets = [8, 0], sizes = [1, 128], strides = [1, 1]} : vector<9x128xbf16> to vector<1x128xbf16>
    %62 = vector.broadcast %61 : vector<1x128xbf16> to vector<16x128xbf16>
    %63 = arith.mulf %60, %62 : vector<16x128xbf16>
    %64 = tpu.concatenate %18, %24, %30, %36, %39, %45, %51, %57, %63 in 0 : vector<16x128xbf16>, vector<16x128xbf16>, vector<16x128xbf16>, vector<16x128xbf16>, vector<16x128xbf16>, vector<16x128xbf16>, vector<16x128xbf16>, vector<16x128xbf16>, vector<16x128xbf16> -> vector<144x128xbf16>
    %c0_9 = arith.constant 0 : index
    %c0_10 = arith.constant 0 : index
    %65 = vector.load %arg5[%c0_9, %c0_10] : memref<16x144xbf16, #tpu.memory_space<vmem>>, vector<16x144xbf16>
    %cst_11 = arith.constant dense<0.000000e+00> : vector<16x128xf32>
    %66 = tpu.matmul %65, %64, %cst_11 {dimension_numbers = #tpu.dot_dimension_numbers<[1], [0], [0], [1], [0, 0, 1, 1], [], []>} : vector<16x144xbf16>, vector<144x128xbf16>, vector<16x128xf32> -> vector<16x128xf32>
    %c0_12 = arith.constant 0 : index
    %c0_13 = arith.constant 0 : index
    %67 = vector.load %arg6[%c0_12, %c0_13] : memref<16x1xf32, #tpu.memory_space<vmem>>, vector<16x1xf32>
    %68 = vector.broadcast %67 : vector<16x1xf32> to vector<16x128xf32>
    %69 = arith.addf %66, %68 : vector<16x128xf32>
    %cst_14 = arith.constant 0.000000e+00 : f32
    %70 = vector.broadcast %cst_14 : f32 to vector<16x128xf32>
    %71 = arith.cmpf oge, %69, %70 : vector<16x128xf32>
    %cst_15 = arith.constant 0.00999999977 : f32
    %72 = vector.broadcast %cst_15 : f32 to vector<16x128xf32>
    %73 = arith.mulf %72, %69 : vector<16x128xf32>
    %74 = arith.select %71, %69, %73 : vector<16x128xi1>, vector<16x128xf32>
    %75 = arith.truncf %74 : vector<16x128xf32> to vector<16x128xbf16>
    %76 = vector.extract_strided_slice %75 {offsets = [0, 123], sizes = [16, 5], strides = [1, 1]} : vector<16x128xbf16> to vector<16x5xbf16>
    %77 = vector.extract_strided_slice %75 {offsets = [0, 0], sizes = [16, 123], strides = [1, 1]} : vector<16x128xbf16> to vector<16x123xbf16>
    %78 = tpu.concatenate %76, %77 in 1 : vector<16x5xbf16>, vector<16x123xbf16> -> vector<16x128xbf16>
    %79 = vector.extract_strided_slice %0 {offsets = [0, 0], sizes = [1, 128], strides = [1, 1]} : vector<9x128xbf16> to vector<1x128xbf16>
    %80 = vector.broadcast %79 : vector<1x128xbf16> to vector<16x128xbf16>
    %81 = arith.mulf %78, %80 : vector<16x128xbf16>
    %82 = vector.extract_strided_slice %75 {offsets = [0, 124], sizes = [16, 4], strides = [1, 1]} : vector<16x128xbf16> to vector<16x4xbf16>
    %83 = vector.extract_strided_slice %75 {offsets = [0, 0], sizes = [16, 124], strides = [1, 1]} : vector<16x128xbf16> to vector<16x124xbf16>
    %84 = tpu.concatenate %82, %83 in 1 : vector<16x4xbf16>, vector<16x124xbf16> -> vector<16x128xbf16>
    %85 = vector.extract_strided_slice %0 {offsets = [1, 0], sizes = [1, 128], strides = [1, 1]} : vector<9x128xbf16> to vector<1x128xbf16>
    %86 = vector.broadcast %85 : vector<1x128xbf16> to vector<16x128xbf16>
    %87 = arith.mulf %84, %86 : vector<16x128xbf16>
    %88 = vector.extract_strided_slice %75 {offsets = [0, 125], sizes = [16, 3], strides = [1, 1]} : vector<16x128xbf16> to vector<16x3xbf16>
    %89 = vector.extract_strided_slice %75 {offsets = [0, 0], sizes = [16, 125], strides = [1, 1]} : vector<16x128xbf16> to vector<16x125xbf16>
    %90 = tpu.concatenate %88, %89 in 1 : vector<16x3xbf16>, vector<16x125xbf16> -> vector<16x128xbf16>
    %91 = vector.extract_strided_slice %0 {offsets = [2, 0], sizes = [1, 128], strides = [1, 1]} : vector<9x128xbf16> to vector<1x128xbf16>
    %92 = vector.broadcast %91 : vector<1x128xbf16> to vector<16x128xbf16>
    %93 = arith.mulf %90, %92 : vector<16x128xbf16>
    %94 = vector.extract_strided_slice %75 {offsets = [0, 127], sizes = [16, 1], strides = [1, 1]} : vector<16x128xbf16> to vector<16x1xbf16>
    %95 = vector.extract_strided_slice %75 {offsets = [0, 0], sizes = [16, 127], strides = [1, 1]} : vector<16x128xbf16> to vector<16x127xbf16>
    %96 = tpu.concatenate %94, %95 in 1 : vector<16x1xbf16>, vector<16x127xbf16> -> vector<16x128xbf16>
    %97 = vector.extract_strided_slice %0 {offsets = [3, 0], sizes = [1, 128], strides = [1, 1]} : vector<9x128xbf16> to vector<1x128xbf16>
    %98 = vector.broadcast %97 : vector<1x128xbf16> to vector<16x128xbf16>
    %99 = arith.mulf %96, %98 : vector<16x128xbf16>
    %100 = vector.extract_strided_slice %0 {offsets = [4, 0], sizes = [1, 128], strides = [1, 1]} : vector<9x128xbf16> to vector<1x128xbf16>
    %101 = vector.broadcast %100 : vector<1x128xbf16> to vector<16x128xbf16>
    %102 = arith.mulf %75, %101 : vector<16x128xbf16>
    %103 = vector.extract_strided_slice %75 {offsets = [0, 1], sizes = [16, 127], strides = [1, 1]} : vector<16x128xbf16> to vector<16x127xbf16>
    %104 = vector.extract_strided_slice %75 {offsets = [0, 0], sizes = [16, 1], strides = [1, 1]} : vector<16x128xbf16> to vector<16x1xbf16>
    %105 = tpu.concatenate %103, %104 in 1 : vector<16x127xbf16>, vector<16x1xbf16> -> vector<16x128xbf16>
    %106 = vector.extract_strided_slice %0 {offsets = [5, 0], sizes = [1, 128], strides = [1, 1]} : vector<9x128xbf16> to vector<1x128xbf16>
    %107 = vector.broadcast %106 : vector<1x128xbf16> to vector<16x128xbf16>
    %108 = arith.mulf %105, %107 : vector<16x128xbf16>
    %109 = vector.extract_strided_slice %75 {offsets = [0, 3], sizes = [16, 125], strides = [1, 1]} : vector<16x128xbf16> to vector<16x125xbf16>
    %110 = vector.extract_strided_slice %75 {offsets = [0, 0], sizes = [16, 3], strides = [1, 1]} : vector<16x128xbf16> to vector<16x3xbf16>
    %111 = tpu.concatenate %109, %110 in 1 : vector<16x125xbf16>, vector<16x3xbf16> -> vector<16x128xbf16>
    %112 = vector.extract_strided_slice %0 {offsets = [6, 0], sizes = [1, 128], strides = [1, 1]} : vector<9x128xbf16> to vector<1x128xbf16>
    %113 = vector.broadcast %112 : vector<1x128xbf16> to vector<16x128xbf16>
    %114 = arith.mulf %111, %113 : vector<16x128xbf16>
    %115 = vector.extract_strided_slice %75 {offsets = [0, 4], sizes = [16, 124], strides = [1, 1]} : vector<16x128xbf16> to vector<16x124xbf16>
    %116 = vector.extract_strided_slice %75 {offsets = [0, 0], sizes = [16, 4], strides = [1, 1]} : vector<16x128xbf16> to vector<16x4xbf16>
    %117 = tpu.concatenate %115, %116 in 1 : vector<16x124xbf16>, vector<16x4xbf16> -> vector<16x128xbf16>
    %118 = vector.extract_strided_slice %0 {offsets = [7, 0], sizes = [1, 128], strides = [1, 1]} : vector<9x128xbf16> to vector<1x128xbf16>
    %119 = vector.broadcast %118 : vector<1x128xbf16> to vector<16x128xbf16>
    %120 = arith.mulf %117, %119 : vector<16x128xbf16>
    %121 = vector.extract_strided_slice %75 {offsets = [0, 5], sizes = [16, 123], strides = [1, 1]} : vector<16x128xbf16> to vector<16x123xbf16>
    %122 = vector.extract_strided_slice %75 {offsets = [0, 0], sizes = [16, 5], strides = [1, 1]} : vector<16x128xbf16> to vector<16x5xbf16>
    %123 = tpu.concatenate %121, %122 in 1 : vector<16x123xbf16>, vector<16x5xbf16> -> vector<16x128xbf16>
    %124 = vector.extract_strided_slice %0 {offsets = [8, 0], sizes = [1, 128], strides = [1, 1]} : vector<9x128xbf16> to vector<1x128xbf16>
    %125 = vector.broadcast %124 : vector<1x128xbf16> to vector<16x128xbf16>
    %126 = arith.mulf %123, %125 : vector<16x128xbf16>
    %127 = tpu.concatenate %81, %87, %93, %99, %102, %108, %114, %120, %126 in 0 : vector<16x128xbf16>, vector<16x128xbf16>, vector<16x128xbf16>, vector<16x128xbf16>, vector<16x128xbf16>, vector<16x128xbf16>, vector<16x128xbf16>, vector<16x128xbf16>, vector<16x128xbf16> -> vector<144x128xbf16>
    %c0_16 = arith.constant 0 : index
    %c0_17 = arith.constant 0 : index
    %128 = vector.load %arg7[%c0_16, %c0_17] : memref<16x144xbf16, #tpu.memory_space<vmem>>, vector<16x144xbf16>
    %cst_18 = arith.constant dense<0.000000e+00> : vector<16x128xf32>
    %129 = tpu.matmul %128, %127, %cst_18 {dimension_numbers = #tpu.dot_dimension_numbers<[1], [0], [0], [1], [0, 0, 1, 1], [], []>} : vector<16x144xbf16>, vector<144x128xbf16>, vector<16x128xf32> -> vector<16x128xf32>
    %c0_19 = arith.constant 0 : index
    %c0_20 = arith.constant 0 : index
    %130 = vector.load %arg8[%c0_19, %c0_20] : memref<16x1xf32, #tpu.memory_space<vmem>>, vector<16x1xf32>
    %131 = vector.broadcast %130 : vector<16x1xf32> to vector<16x128xf32>
    %132 = arith.addf %129, %131 : vector<16x128xf32>
    %133 = arith.addf %132, %11 : vector<16x128xf32>
    %cst_21 = arith.constant 0.000000e+00 : f32
    %134 = vector.broadcast %cst_21 : f32 to vector<16x128xf32>
    %135 = arith.cmpf oge, %133, %134 : vector<16x128xf32>
    %cst_22 = arith.constant 0.00999999977 : f32
    %136 = vector.broadcast %cst_22 : f32 to vector<16x128xf32>
    %137 = arith.mulf %136, %133 : vector<16x128xf32>
    %138 = arith.select %135, %133, %137 : vector<16x128xi1>, vector<16x128xf32>
    %139 = arith.truncf %138 : vector<16x128xf32> to vector<16x128xbf16>
    %140 = vector.extract_strided_slice %139 {offsets = [0, 123], sizes = [16, 5], strides = [1, 1]} : vector<16x128xbf16> to vector<16x5xbf16>
    %141 = vector.extract_strided_slice %139 {offsets = [0, 0], sizes = [16, 123], strides = [1, 1]} : vector<16x128xbf16> to vector<16x123xbf16>
    %142 = tpu.concatenate %140, %141 in 1 : vector<16x5xbf16>, vector<16x123xbf16> -> vector<16x128xbf16>
    %143 = vector.extract_strided_slice %0 {offsets = [0, 0], sizes = [1, 128], strides = [1, 1]} : vector<9x128xbf16> to vector<1x128xbf16>
    %144 = vector.broadcast %143 : vector<1x128xbf16> to vector<16x128xbf16>
    %145 = arith.mulf %142, %144 : vector<16x128xbf16>
    %146 = vector.extract_strided_slice %139 {offsets = [0, 124], sizes = [16, 4], strides = [1, 1]} : vector<16x128xbf16> to vector<16x4xbf16>
    %147 = vector.extract_strided_slice %139 {offsets = [0, 0], sizes = [16, 124], strides = [1, 1]} : vector<16x128xbf16> to vector<16x124xbf16>
    %148 = tpu.concatenate %146, %147 in 1 : vector<16x4xbf16>, vector<16x124xbf16> -> vector<16x128xbf16>
    %149 = vector.extract_strided_slice %0 {offsets = [1, 0], sizes = [1, 128], strides = [1, 1]} : vector<9x128xbf16> to vector<1x128xbf16>
    %150 = vector.broadcast %149 : vector<1x128xbf16> to vector<16x128xbf16>
    %151 = arith.mulf %148, %150 : vector<16x128xbf16>
    %152 = vector.extract_strided_slice %139 {offsets = [0, 125], sizes = [16, 3], strides = [1, 1]} : vector<16x128xbf16> to vector<16x3xbf16>
    %153 = vector.extract_strided_slice %139 {offsets = [0, 0], sizes = [16, 125], strides = [1, 1]} : vector<16x128xbf16> to vector<16x125xbf16>
    %154 = tpu.concatenate %152, %153 in 1 : vector<16x3xbf16>, vector<16x125xbf16> -> vector<16x128xbf16>
    %155 = vector.extract_strided_slice %0 {offsets = [2, 0], sizes = [1, 128], strides = [1, 1]} : vector<9x128xbf16> to vector<1x128xbf16>
    %156 = vector.broadcast %155 : vector<1x128xbf16> to vector<16x128xbf16>
    %157 = arith.mulf %154, %156 : vector<16x128xbf16>
    %158 = vector.extract_strided_slice %139 {offsets = [0, 127], sizes = [16, 1], strides = [1, 1]} : vector<16x128xbf16> to vector<16x1xbf16>
    %159 = vector.extract_strided_slice %139 {offsets = [0, 0], sizes = [16, 127], strides = [1, 1]} : vector<16x128xbf16> to vector<16x127xbf16>
    %160 = tpu.concatenate %158, %159 in 1 : vector<16x1xbf16>, vector<16x127xbf16> -> vector<16x128xbf16>
    %161 = vector.extract_strided_slice %0 {offsets = [3, 0], sizes = [1, 128], strides = [1, 1]} : vector<9x128xbf16> to vector<1x128xbf16>
    %162 = vector.broadcast %161 : vector<1x128xbf16> to vector<16x128xbf16>
    %163 = arith.mulf %160, %162 : vector<16x128xbf16>
    %164 = vector.extract_strided_slice %0 {offsets = [4, 0], sizes = [1, 128], strides = [1, 1]} : vector<9x128xbf16> to vector<1x128xbf16>
    %165 = vector.broadcast %164 : vector<1x128xbf16> to vector<16x128xbf16>
    %166 = arith.mulf %139, %165 : vector<16x128xbf16>
    %167 = vector.extract_strided_slice %139 {offsets = [0, 1], sizes = [16, 127], strides = [1, 1]} : vector<16x128xbf16> to vector<16x127xbf16>
    %168 = vector.extract_strided_slice %139 {offsets = [0, 0], sizes = [16, 1], strides = [1, 1]} : vector<16x128xbf16> to vector<16x1xbf16>
    %169 = tpu.concatenate %167, %168 in 1 : vector<16x127xbf16>, vector<16x1xbf16> -> vector<16x128xbf16>
    %170 = vector.extract_strided_slice %0 {offsets = [5, 0], sizes = [1, 128], strides = [1, 1]} : vector<9x128xbf16> to vector<1x128xbf16>
    %171 = vector.broadcast %170 : vector<1x128xbf16> to vector<16x128xbf16>
    %172 = arith.mulf %169, %171 : vector<16x128xbf16>
    %173 = vector.extract_strided_slice %139 {offsets = [0, 3], sizes = [16, 125], strides = [1, 1]} : vector<16x128xbf16> to vector<16x125xbf16>
    %174 = vector.extract_strided_slice %139 {offsets = [0, 0], sizes = [16, 3], strides = [1, 1]} : vector<16x128xbf16> to vector<16x3xbf16>
    %175 = tpu.concatenate %173, %174 in 1 : vector<16x125xbf16>, vector<16x3xbf16> -> vector<16x128xbf16>
    %176 = vector.extract_strided_slice %0 {offsets = [6, 0], sizes = [1, 128], strides = [1, 1]} : vector<9x128xbf16> to vector<1x128xbf16>
    %177 = vector.broadcast %176 : vector<1x128xbf16> to vector<16x128xbf16>
    %178 = arith.mulf %175, %177 : vector<16x128xbf16>
    %179 = vector.extract_strided_slice %139 {offsets = [0, 4], sizes = [16, 124], strides = [1, 1]} : vector<16x128xbf16> to vector<16x124xbf16>
    %180 = vector.extract_strided_slice %139 {offsets = [0, 0], sizes = [16, 4], strides = [1, 1]} : vector<16x128xbf16> to vector<16x4xbf16>
    %181 = tpu.concatenate %179, %180 in 1 : vector<16x124xbf16>, vector<16x4xbf16> -> vector<16x128xbf16>
    %182 = vector.extract_strided_slice %0 {offsets = [7, 0], sizes = [1, 128], strides = [1, 1]} : vector<9x128xbf16> to vector<1x128xbf16>
    %183 = vector.broadcast %182 : vector<1x128xbf16> to vector<16x128xbf16>
    %184 = arith.mulf %181, %183 : vector<16x128xbf16>
    %185 = vector.extract_strided_slice %139 {offsets = [0, 5], sizes = [16, 123], strides = [1, 1]} : vector<16x128xbf16> to vector<16x123xbf16>
    %186 = vector.extract_strided_slice %139 {offsets = [0, 0], sizes = [16, 5], strides = [1, 1]} : vector<16x128xbf16> to vector<16x5xbf16>
    %187 = tpu.concatenate %185, %186 in 1 : vector<16x123xbf16>, vector<16x5xbf16> -> vector<16x128xbf16>
    %188 = vector.extract_strided_slice %0 {offsets = [8, 0], sizes = [1, 128], strides = [1, 1]} : vector<9x128xbf16> to vector<1x128xbf16>
    %189 = vector.broadcast %188 : vector<1x128xbf16> to vector<16x128xbf16>
    %190 = arith.mulf %187, %189 : vector<16x128xbf16>
    %191 = tpu.concatenate %145, %151, %157, %163, %166, %172, %178, %184, %190 in 0 : vector<16x128xbf16>, vector<16x128xbf16>, vector<16x128xbf16>, vector<16x128xbf16>, vector<16x128xbf16>, vector<16x128xbf16>, vector<16x128xbf16>, vector<16x128xbf16>, vector<16x128xbf16> -> vector<144x128xbf16>
    %c0_23 = arith.constant 0 : index
    %c0_24 = arith.constant 0 : index
    %192 = vector.load %arg9[%c0_23, %c0_24] : memref<16x144xbf16, #tpu.memory_space<vmem>>, vector<16x144xbf16>
    %cst_25 = arith.constant dense<0.000000e+00> : vector<16x128xf32>
    %193 = tpu.matmul %192, %191, %cst_25 {dimension_numbers = #tpu.dot_dimension_numbers<[1], [0], [0], [1], [0, 0, 1, 1], [], []>} : vector<16x144xbf16>, vector<144x128xbf16>, vector<16x128xf32> -> vector<16x128xf32>
    %c0_26 = arith.constant 0 : index
    %c0_27 = arith.constant 0 : index
    %194 = vector.load %arg10[%c0_26, %c0_27] : memref<16x1xf32, #tpu.memory_space<vmem>>, vector<16x1xf32>
    %195 = vector.broadcast %194 : vector<16x1xf32> to vector<16x128xf32>
    %196 = arith.addf %193, %195 : vector<16x128xf32>
    %cst_28 = arith.constant 0.000000e+00 : f32
    %197 = vector.broadcast %cst_28 : f32 to vector<16x128xf32>
    %198 = arith.subf %197, %196 : vector<16x128xf32>
    %199 = math.exp %198 : vector<16x128xf32>
    %cst_29 = arith.constant 1.000000e+00 : f32
    %200 = vector.broadcast %cst_29 : f32 to vector<16x128xf32>
    %201 = arith.addf %200, %199 : vector<16x128xf32>
    %cst_30 = arith.constant 1.000000e+00 : f32
    %202 = vector.broadcast %cst_30 : f32 to vector<16x128xf32>
    %203 = arith.divf %202, %201 : vector<16x128xf32>
    %c0_31 = arith.constant 0 : index
    %c0_32 = arith.constant 0 : index
    %204 = vector.load %arg11[%c0_31, %c0_32] : memref<16x128xf32, #tpu.memory_space<vmem>>, vector<16x128xf32>
    tpu.vector_store %arg11[%c0_31, %c0_32], %203 {strides = array<i32>} : memref<16x128xf32, #tpu.memory_space<vmem>>, vector<16x128xf32>,
    return
  }
  func.func @transform_0(%arg0: i32) -> (i32, i32) {
    %c0_i32 = arith.constant 0 : i32
    %c0_i32_0 = arith.constant 0 : i32
    %c0_i32_1 = arith.constant 0 : i32
    return %c0_i32, %c0_i32_0 : i32, i32
  }
  func.func @transform_1(%arg0: i32) -> (i32, i32) {
    %c0_i32 = arith.constant 0 : i32
    %c0_i32_0 = arith.constant 0 : i32
    %c0_i32_1 = arith.constant 0 : i32
    return %c0_i32, %c0_i32_0 : i32, i32
  }
  func.func @transform_2(%arg0: i32) -> (i32, i32) {
    %c0_i32 = arith.constant 0 : i32
    %c0_i32_0 = arith.constant 0 : i32
    %c0_i32_1 = arith.constant 0 : i32
    return %c0_i32, %c0_i32_0 : i32, i32
  }
  func.func @transform_3(%arg0: i32) -> (i32, i32) {
    %c0_i32 = arith.constant 0 : i32
    %c0_i32_0 = arith.constant 0 : i32
    %c0_i32_1 = arith.constant 0 : i32
    return %c0_i32, %c0_i32_0 : i32, i32
  }
  func.func @transform_4(%arg0: i32) -> (i32, i32) {
    %c0_i32 = arith.constant 0 : i32
    %c0_i32_0 = arith.constant 0 : i32
    %c0_i32_1 = arith.constant 0 : i32
    return %c0_i32, %c0_i32_0 : i32, i32
  }
  func.func @transform_5(%arg0: i32) -> (i32, i32) {
    %c0_i32 = arith.constant 0 : i32
    %c0_i32_0 = arith.constant 0 : i32
    %c0_i32_1 = arith.constant 0 : i32
    return %c0_i32, %c0_i32_0 : i32, i32
  }
  func.func @transform_6(%arg0: i32) -> (i32, i32) {
    %c0_i32 = arith.constant 0 : i32
    %c0_i32_0 = arith.constant 0 : i32
    %c0_i32_1 = arith.constant 0 : i32
    return %c0_i32, %c0_i32_0 : i32, i32
  }
  func.func @transform_7(%arg0: i32) -> (i32, i32) {
    %c0_i32 = arith.constant 0 : i32
    %c0_i32_0 = arith.constant 0 : i32
    %c0_i32_1 = arith.constant 0 : i32
    return %c0_i32, %c0_i32_0 : i32, i32
  }
  func.func @transform_8(%arg0: i32) -> (i32, i32) {
    %c0_i32 = arith.constant 0 : i32
    %c0_i32_0 = arith.constant 0 : i32
    %c0_i32_1 = arith.constant 0 : i32
    return %c0_i32, %c0_i32_0 : i32, i32
  }
  func.func @transform_9(%arg0: i32) -> (i32, i32) {
    %c0_i32 = arith.constant 0 : i32
    %c0_i32_0 = arith.constant 0 : i32
    %c0_i32_1 = arith.constant 0 : i32
    return %c0_i32, %c0_i32_0 : i32, i32
  }
  func.func @transform_10(%arg0: i32) -> (i32, i32) {
    %c0_i32 = arith.constant 0 : i32
    %c0_i32_0 = arith.constant 0 : i32
    %c0_i32_1 = arith.constant 0 : i32
    return %c0_i32, %c0_i32_0 : i32, i32
  }
}

</mosaic_0001>

<bundles_post_ra>
// kernel: encoder_forward.2
= control target key start
LH: loop header
LB: loop body
LE: loop exit
PB: predicated region body
PF: predicated region fallthrough
CT: control target
= control target key end

     0   :  { %v490_v0 = vmov 0.0   ;;  %vm491_vm0 = vmmov 0   ;;  %v492_v2 = vmov 0   ;;  %vm83_vm1 = vcmask 523264   ;;  %s496_s19 = smov 8   ;;  %s497_s20 = smov 120   ;;  %s682_s0 = inlined_call_operand.vmem [shape: bf16[64,128], index: 0, kind: input, shape index: {}]   ;;  %s683_s3 = inlined_call_operand.vmem [shape: f32[16,1], index: 3, kind: input, shape index: {}]   ;;  %s684_s2 = inlined_call_operand.vmem [shape: bf16[16,64], index: 2, kind: input, shape index: {}]   ;;  %s685_s5 = inlined_call_operand.vmem [shape: f32[16,1], index: 5, kind: input, shape index: {}]   ;;  %s686_s4 = inlined_call_operand.vmem [shape: bf16[16,144], index: 4, kind: input, shape index: {}]   ;;  %s687_s1 = inlined_call_operand.vmem [shape: bf16[9,128], index: 1, kind: input, shape index: {}]   ;;  %s688_s7 = inlined_call_operand.vmem [shape: f32[16,1], index: 7, kind: input, shape index: {}]   ;;  %s689_s6 = inlined_call_operand.vmem [shape: bf16[16,144], index: 6, kind: input, shape index: {}]   ;;  %s690_s8 = inlined_call_operand.vmem [shape: bf16[16,128], index: 8, kind: output, shape index: {}]  }
   0x1   :  { %454 = vmatprep.subr.bf16.mxu0 %v490_v0  ;;  %v479_v1 = vld [vmem:[%s682_s0] sm:$0xff]   ;;  %462 = vmatprep.mubr.msk.bf16.mxu0 %vm491_vm0, %v490_v0  ;;  %v480_v3 = vld [vmem:[%s682_s0 + $0x8] sm:$0xff]   ;;  %v481_v5 = vld [vmem:[%s682_s0 + $0x10] sm:$0xff]   ;;  %s498_s21 = smov 1   ;;  %s499_s24 = smov 121   ;;  %vm245_vm4 = vcmask 130048   ;;  %v143_v25 = vlaneseq }
   0x2   :  { %477 = vset.pattern.permute.xlu0 %v492_v2  ;;  %249 = vmatprep.subr.bf16.mxu1 %v492_v2  ;;  %v42_v4 = vld [vmem:[%s683_s3] sm:$0xff]  ;;  %v43_v6 = vld [vmem:[%s683_s3 + $0x8] sm:$0xff]  ;;  %v482_v7 = vld [vmem:[%s682_s0 + $0x18] sm:$0xff]   ;;  %s493_s0 = smov 7   ;;  %s495_s3 = smov 127  }
   0x3   :  { %455 = vmatpush3.bf16.msra.mxu0 %v479_v1  ;;  %478 = vset.pattern.permute.xlu1 %v492_v2  ;;  %v483_v8 = vld [vmem:[%s684_s2] sm:$0xff]   ;;  %s494_s2 = smov 9   ;;  %s500_s25 = smov 119   ;;  %v225_v24 = vld [vmem:[%s685_s5 + $0x8] sm:$0xff]  ;;  %v144_v26 = vshrl.u32 %v143_v25, 7 }
   0x4   :  { %456 = vmatprep.subr.bf16.mxu0 %v490_v0  ;;  %46 = vperm.xlu0 %477, %v42_v4   ;;  %v224_v22 = vld [vmem:[%s685_s5] sm:$0xff] }
   0x5   :  { %v486_v23 = vld [vmem:[%s686_s4 + $0x4] ss:$8 sps:$4 sm:$0xff]   ;;  %v30_v27 = vld [vmem:[%s687_s1] sm:$0xf]  ;;  %v145_v28 = vsub.s32 0, %v144_v26  ;;  %v166_v34 = vsub.s32 1, %v144_v26 }
   0x6   :  { %436 = vmatprep.mubr.msk.bf16.mxu1 %vm245_vm4, %v486_v23  ;;  %v152_v29 = vshrl.u32 %v30_v27, 16  ;;  %v141_v30 = vpack.i.b16 %v30_v27, %v30_v27  ;;  %v180_v42 = vsub.s32 2, %v144_v26  ;;  %v198_v50 = vsub.s32 3, %v144_v26  ;;  %v31_v54 = vld [vmem:[%s687_s1 + $0x4] sm:$0x1] }
   0x7   :  { %457 = vmatpush3.bf16.msra.mxu0 %v480_v3  ;;  %v215_v57 = vpack.i.b16 %v31_v54, %v31_v54  ;;  %v484_v63 = vld [vmem:[%s686_s4] ss:$8 sps:$4 sm:$0xff]  }
   0x8   :  { %458 = vmatprep.subr.bf16.mxu0 %v490_v0  ;;  %51 = vperm.xlu0 %477, %v43_v6   ;;  %v598_v31 = vrot.slane %v141_v30, %v145_v28  ;;  %v153_v32 = vpack.i.b16 %v152_v29, %v152_v29  ;;  %v604_v38 = vrot.slane %v141_v30, %v166_v34 }
   0x9   :  { %v613_v46 = vrot.slane %v141_v30, %v180_v42  ;;  %v621_v52 = vrot.slane %v141_v30, %v198_v50  ;;  %v632_v60 = vrot.slane %v215_v57, %v145_v28 }
   0xa   :  { %v601_v36 = vrot.slane %v153_v32, %v145_v28  ;;  %v609_v43 = vrot.slane %v153_v32, %v166_v34  ;;  %v616_v47 = vrot.slane %v153_v32, %v180_v42  ;;  %v627_v55 = vrot.slane %v153_v32, %v198_v50 }
   0xb   :  { %459 = vmatpush3.bf16.msra.mxu0 %v481_v5 }
   0xc   :  { %460 = vmatprep.subr.bf16.mxu0 %v490_v0 }
   0xf   :  { %461 = vmatpush3.bf16.msra.mxu0 %v482_v7 }
  0x10   :  { %365 = vmatprep.subr.bf16.mxu0 %v492_v2 }
  0x12   :  { %463 = vmatmul.mubr.msk.bf16.vlgmr.msra.gmra.mrb[0].mxu0 %vm83_vm1, %v483_v8 }
  0x83   :  { %v47_v9 = vpop.permute.xlu0 %46 }
  0x87   :  { %v52_v13 = vpop.permute.xlu0 %51 }
  0xe5   :  { %v121_v10 = vpop.f32.mrb[0].mxu0 }
  0xe6   :  { %v122_v11 = vadd.f32 %v121_v10, %v47_v9  ;;  %v464_v12 = vpop.f32.mrb[1].mxu0 }
  0xe7   :  { %v124_v14 = vpop.f32.mrb[2].mxu0 }
  0xe8   :  { %v130_v15 = vmul.f32 0.01, %v122_v11  ;;  %v125_v16 = vadd.f32 %v124_v14, %v52_v13  ;;  %v465_v17 = vpop.f32.mrb[3].mxu0  ;;  %vm128_vm2 = vcmp.ge.f32.partialorder %v122_v11, 0.0  ;;  %v342_v14 = vld [vmem:[%s688_s7 + $0x8] sm:$0xff] }
  0xea   :  { %vm129_vm3 = vcmp.ge.f32.partialorder %v125_v16, 0.0  ;;  %v131_v18 = vmul.f32 0.01, %v125_v16  ;;  %v571_v19 = vsel %vm128_vm2, %v122_v11, %v130_v15  ;;  %v341_v15 = vld [vmem:[%s688_s7] sm:$0xff] }
  0xec   :  { %v573_v20 = vsel %vm129_vm3, %v125_v16, %v131_v18  ;;  %v487_v16 = vld [vmem:[%s689_s6 + $0x4] ss:$8 sps:$4 sm:$0xff]  }
  0xed   :  { %v134_v21 = vpack.c.bf16 %v573_v20, %v571_v19  ;;  %439 = vmatprep.mubr.msk.bf16.mxu0 %vm245_vm4, %v487_v16 }
  0xef   :  { %160 = vrot.lane.b32.xlu0 %v134_v21, %s493_s0  ;;  %136 = vrot.lane.b32.xlu1 %v134_v21, %s494_s2  ;;  %v182_v48 = vmul.bf16 %v613_v46, %v134_v21 }
  0xf3   :  { %183 = vrot.lane.b32.xlu0 %v134_v21, %s495_s3  ;;  %148 = vrot.lane.b32.xlu1 %v134_v21, %s496_s19 }
  0xf7   :  { %201 = vrot.lane.b32.xlu0 %v134_v21, %s497_s20  ;;  %169 = vrot.lane.b32.xlu1 %v134_v21, %s498_s21 }
  0xfb   :  { %228 = vperm.xlu0 %477, %v224_v22   ;;  %192 = vrot.lane.b32.xlu1 %v134_v21, %s499_s24 }
  0xff   :  { %210 = vrot.lane.b32.xlu1 %v134_v21, %s500_s25 }
 0x103   :  { %233 = vperm.xlu1 %478, %v225_v24  }
 0x161   :  { %v137_v33 = vpop.permute.xlu1 %136  ;;  %v161_v40 = vpop.permute.xlu0 %160 }
 0x162   :  { %v147_v35 = vmul.bf16 %v598_v31, %v137_v33  ;;  %v168_v41 = vmul.bf16 %v604_v38, %v161_v40 }
 0x164   :  { %250 = vmatpush1.bf16.msra.mxu1 %v147_v35 }
 0x165   :  { %v149_v37 = vpop.permute.xlu1 %148  ;;  %251 = vmatprep.subr.bf16.mxu1 %v492_v2  ;;  %v184_v49 = vpop.permute.xlu0 %183 }
 0x166   :  { %v159_v39 = vmul.bf16 %v601_v36, %v149_v37  ;;  %v191_v51 = vmul.bf16 %v616_v47, %v184_v49 }
 0x168   :  { %252 = vmatpush1.bf16.msra.mxu1 %v159_v39 }
 0x169   :  { %253 = vmatprep.subr.bf16.mxu1 %v492_v2  ;;  %v170_v44 = vpop.permute.xlu1 %169  ;;  %v202_v58 = vpop.permute.xlu0 %201 }
 0x16a   :  { %v177_v45 = vmul.bf16 %v609_v43, %v170_v44  ;;  %v209_v59 = vmul.bf16 %v627_v55, %v202_v58 }
 0x16c   :  { %254 = vmatpush1.bf16.msra.mxu1 %v168_v41 }
 0x16d   :  { %255 = vmatprep.subr.bf16.mxu1 %v492_v2  ;;  %v193_v53 = vpop.permute.xlu1 %192 }
 0x16e   :  { %v200_v56 = vmul.bf16 %v621_v52, %v193_v53 }
 0x170   :  { %256 = vmatpush1.bf16.msra.mxu1 %v177_v45 }
 0x171   :  { %257 = vmatprep.subr.bf16.mxu1 %v492_v2  ;;  %v211_v61 = vpop.permute.xlu1 %210 }
 0x172   :  { %v221_v62 = vmul.bf16 %v632_v60, %v211_v61 }
 0x174   :  { %258 = vmatpush1.bf16.msra.mxu1 %v182_v48 }
 0x175   :  { %259 = vmatprep.subr.bf16.mxu1 %v492_v2 }
 0x178   :  { %260 = vmatpush1.bf16.msra.mxu1 %v191_v51 }
 0x179   :  { %261 = vmatprep.subr.bf16.mxu1 %v492_v2 }
 0x17a   :  { %v229_v0 = vpop.permute.xlu0 %228 }
 0x17c   :  { %262 = vmatpush1.bf16.msra.mxu1 %v200_v56 }
 0x17d   :  { %263 = vmatprep.subr.bf16.mxu1 %v492_v2 }
 0x180   :  { %264 = vmatpush1.bf16.msra.mxu1 %v209_v59 }
 0x181   :  { %265 = vmatprep.subr.bf16.mxu1 %v492_v2 }
 0x182   :  { %v234_v3 = vpop.permute.xlu1 %233 }
 0x184   :  { %266 = vmatpush1.bf16.msra.mxu1 %v221_v62 }
 0x187   :  { %282 = vmatmul.mubr.bf16.vlgmr.msra.gmra.mrb[0].mxu1 %v484_v63 }
 0x25a   :  { %v283_v1 = vpop.f32.mrb[0].mxu1 }
 0x25b   :  { %v284_v4 = vadd.f32 %v283_v1, %v229_v0  ;;  %v285_v5 = vpop.f32.mrb[1].mxu1 }
 0x25c   :  { %v286_v6 = vpop.f32.mrb[2].mxu1 }
 0x25d   :  { %v292_v7 = vmul.f32 0.01, %v284_v4  ;;  %v287_v8 = vadd.f32 %v286_v6, %v234_v3  ;;  %v288_v9 = vpop.f32.mrb[3].mxu1  ;;  %vm290_vm5 = vcmp.ge.f32.partialorder %v284_v4, 0.0 }
 0x25f   :  { %vm291_vm6 = vcmp.ge.f32.partialorder %v287_v8, 0.0  ;;  %v293_v10 = vmul.f32 0.01, %v287_v8  ;;  %v294_v11 = vsel %vm290_vm5, %v284_v4, %v292_v7 }
 0x261   :  { %v295_v12 = vsel %vm291_vm6, %v287_v8, %v293_v10 }
 0x262   :  { %v296_v13 = vpack.c.bf16 %v295_v12, %v294_v11 }
 0x264   :  { %303 = vrot.lane.b32.xlu1 %v296_v13, %s496_s19  ;;  %298 = vrot.lane.b32.xlu0 %v296_v13, %s494_s2  ;;  %v318_v27 = vmul.bf16 %v296_v13, %v613_v46 }
 0x268   :  { %313 = vrot.lane.b32.xlu1 %v296_v13, %s498_s21  ;;  %308 = vrot.lane.b32.xlu0 %v296_v13, %s493_s0 }
 0x26c   :  { %324 = vrot.lane.b32.xlu1 %v296_v13, %s499_s24  ;;  %319 = vrot.lane.b32.xlu0 %v296_v13, %s495_s3 }
 0x270   :  { %334 = vrot.lane.b32.xlu1 %v296_v13, %s500_s25  ;;  %329 = vrot.lane.b32.xlu0 %v296_v13, %s497_s20 }
 0x274   :  { %350 = vperm.xlu1 %478, %v342_v14   ;;  %345 = vperm.xlu0 %477, %v341_v15  }
 0x2d6   :  { %v299_v17 = vpop.permute.xlu0 %298  ;;  %v304_v21 = vpop.permute.xlu1 %303 }
 0x2d7   :  { %v302_v18 = vmul.bf16 %v299_v17, %v598_v31  ;;  %v307_v22 = vmul.bf16 %v304_v21, %v601_v36  ;;  %v489_v36 = vld [vmem:[%s689_s6] ss:$8 sps:$4 sm:$0xff]  }
 0x2d9   :  { %366 = vmatpush1.bf16.msra.mxu0 %v302_v18 }
 0x2da   :  { %367 = vmatprep.subr.bf16.mxu0 %v492_v2  ;;  %v309_v23 = vpop.permute.xlu0 %308  ;;  %v314_v25 = vpop.permute.xlu1 %313 }
 0x2db   :  { %v312_v24 = vmul.bf16 %v309_v23, %v604_v38  ;;  %v317_v26 = vmul.bf16 %v314_v25, %v609_v43 }
 0x2dd   :  { %368 = vmatpush1.bf16.msra.mxu0 %v307_v22 }
 0x2de   :  { %369 = vmatprep.subr.bf16.mxu0 %v492_v2  ;;  %v320_v28 = vpop.permute.xlu0 %319  ;;  %v325_v30 = vpop.permute.xlu1 %324 }
 0x2df   :  { %v323_v29 = vmul.bf16 %v320_v28, %v616_v47  ;;  %v328_v31 = vmul.bf16 %v325_v30, %v621_v52 }
 0x2e1   :  { %370 = vmatpush1.bf16.msra.mxu0 %v312_v24 }
 0x2e2   :  { %371 = vmatprep.subr.bf16.mxu0 %v492_v2  ;;  %v330_v32 = vpop.permute.xlu0 %329  ;;  %v335_v34 = vpop.permute.xlu1 %334 }
 0x2e3   :  { %v333_v33 = vmul.bf16 %v330_v32, %v627_v55  ;;  %v338_v35 = vmul.bf16 %v335_v34, %v632_v60 }
 0x2e5   :  { %372 = vmatpush1.bf16.msra.mxu0 %v317_v26 }
 0x2e6   :  { %373 = vmatprep.subr.bf16.mxu0 %v492_v2 }
 0x2e9   :  { %374 = vmatpush1.bf16.msra.mxu0 %v318_v27 }
 0x2ea   :  { %375 = vmatprep.subr.bf16.mxu0 %v492_v2 }
 0x2ed   :  { %376 = vmatpush1.bf16.msra.mxu0 %v323_v29 }
 0x2ee   :  { %377 = vmatprep.subr.bf16.mxu0 %v492_v2 }
 0x2f1   :  { %378 = vmatpush1.bf16.msra.mxu0 %v328_v31 }
 0x2f2   :  { %379 = vmatprep.subr.bf16.mxu0 %v492_v2 }
 0x2f3   :  { %v346_v37 = vpop.permute.xlu0 %345  ;;  %v351_v41 = vpop.permute.xlu1 %350 }
 0x2f5   :  { %380 = vmatpush1.bf16.msra.mxu0 %v333_v33 }
 0x2f6   :  { %381 = vmatprep.subr.bf16.mxu0 %v492_v2 }
 0x2f9   :  { %382 = vmatpush1.bf16.msra.mxu0 %v338_v35 }
 0x2fc   :  { %398 = vmatmul.mubr.bf16.vlgmr.msra.gmra.mrb[4].mxu0 %v489_v36 }
 0x3cf   :  { %v399_v38 = vpop.f32.mrb[4].mxu0 }
 0x3d0   :  { %v400_v39 = vadd.f32 %v399_v38, %v346_v37  ;;  %v401_v40 = vpop.f32.mrb[5].mxu0 }
 0x3d1   :  { %v402_v42 = vpop.f32.mrb[6].mxu0 }
 0x3d2   :  { %v406_v43 = vadd.f32 %v400_v39, %v571_v19  ;;  %v403_v44 = vadd.f32 %v402_v42, %v351_v41  ;;  %v404_v45 = vpop.f32.mrb[7].mxu0 }
 0x3d4   :  { %v410_v46 = vmul.f32 0.01, %v406_v43  ;;  %v407_v2 = vadd.f32 %v403_v44, %v573_v20  ;;  %vm408_vm7 = vcmp.ge.f32.partialorder %v406_v43, 0.0 }
 0x3d6   :  { %vm409_vm8 = vcmp.ge.f32.partialorder %v407_v2, 0.0  ;;  %v411_v47 = vmul.f32 0.01, %v407_v2  ;;  %v412_v48 = vsel %vm408_vm7, %v406_v43, %v410_v46 }
 0x3d8   :  { %v413_v49 = vsel %vm409_vm8, %v407_v2, %v411_v47 }
 0x3d9   :  { %v447_v50 = vpack.c.bf16 %v413_v49, %v412_v48 }
 0x3db   :  { %448 = vst [vmem:[%s690_s8] sm:$0xff] %v447_v50  }

// kernel: encoder_forward.3
= control target key start
LH: loop header
LB: loop body
LE: loop exit
PB: predicated region body
PF: predicated region fallthrough
CT: control target
= control target key end

     0   :  { %v663_v0 = vmov 0.0   ;;  %vm664_vm0 = vmmov 0   ;;  %v665_v2 = vmov 0   ;;  %s668_s14 = smov 127   ;;  %s669_s15 = smov 4   ;;  %vm280_vm3 = vcmask 130048   ;;  %s919_s0 = inlined_call_operand.vmem [shape: bf16[128,128], index: 0, kind: input, shape index: {}]   ;;  %s920_s3 = inlined_call_operand.vmem [shape: f32[16,1], index: 3, kind: input, shape index: {}]   ;;  %s921_s2 = inlined_call_operand.vmem [shape: bf16[16,128], index: 2, kind: input, shape index: {}]   ;;  %s922_s5 = inlined_call_operand.vmem [shape: f32[16,1], index: 5, kind: input, shape index: {}]   ;;  %s923_s4 = inlined_call_operand.vmem [shape: bf16[16,144], index: 4, kind: input, shape index: {}]   ;;  %s924_s1 = inlined_call_operand.vmem [shape: bf16[9,128], index: 1, kind: input, shape index: {}]   ;;  %s925_s7 = inlined_call_operand.vmem [shape: f32[16,1], index: 7, kind: input, shape index: {}]   ;;  %s926_s6 = inlined_call_operand.vmem [shape: bf16[16,144], index: 6, kind: input, shape index: {}]   ;;  %s927_s9 = inlined_call_operand.vmem [shape: f32[16,1], index: 9, kind: input, shape index: {}]   ;;  %s928_s8 = inlined_call_operand.vmem [shape: bf16[16,144], index: 8, kind: input, shape index: {}]   ;;  %s929_s10 = inlined_call_operand.vmem [shape: f32[16,128], index: 10, kind: output, shape index: {}]  }
   0x1   :  { %604 = vmatprep.subr.bf16.mxu0 %v663_v0  ;;  %v637_v1 = vld [vmem:[%s919_s0] sm:$0xff]   ;;  %620 = vmatprep.mubr.msk.bf16.mxu0 %vm664_vm0, %v663_v0  ;;  %v638_v3 = vld [vmem:[%s919_s0 + $0x8] sm:$0xff]   ;;  %v639_v4 = vld [vmem:[%s919_s0 + $0x10] sm:$0xff]   ;;  %s670_s16 = smov 124   ;;  %s671_s17 = smov 1   ;;  %v178_v29 = vlaneseq }
   0x2   :  { %635 = vset.pattern.permute.xlu0 %v665_v2  ;;  %284 = vmatprep.subr.bf16.mxu1 %v665_v2  ;;  %v56_v5 = vld [vmem:[%s920_s3] sm:$0xff]  ;;  %v640_v6 = vld [vmem:[%s919_s0 + $0x18] sm:$0xff]   ;;  %v57_v7 = vld [vmem:[%s920_s3 + $0x8] sm:$0xff]  ;;  %s672_s20 = smov 125   ;;  %s673_s21 = smov 123  }
   0x3   :  { %605 = vmatpush3.bf16.msra.mxu0 %v637_v1  ;;  %636 = vset.pattern.permute.xlu1 %v665_v2  ;;  %v641_v8 = vld [vmem:[%s919_s0 + $0x20] sm:$0xff]   ;;  %v642_v9 = vld [vmem:[%s919_s0 + $0x28] sm:$0xff]   ;;  %v643_v10 = vld [vmem:[%s919_s0 + $0x30] sm:$0xff]   ;;  %v179_v30 = vshrl.u32 %v178_v29, 7 }
   0x4   :  { %606 = vmatprep.subr.bf16.mxu0 %v663_v0  ;;  %60 = vperm.xlu0 %635, %v56_v5   ;;  %v644_v11 = vld [vmem:[%s919_s0 + $0x38] sm:$0xff]   ;;  %v645_v12 = vld [vmem:[%s921_s2] sm:$0xff]   ;;  %s666_s0 = smov 3   ;;  %s667_s2 = smov 5   ;;  %v260_v28 = vld [vmem:[%s922_s5 + $0x8] sm:$0xff] }
   0x5   :  { %v259_v26 = vld [vmem:[%s922_s5] sm:$0xff]  ;;  %v180_v32 = vsub.s32 0, %v179_v30  ;;  %v201_v38 = vsub.s32 1, %v179_v30  ;;  %v215_v46 = vsub.s32 2, %v179_v30  ;;  %v233_v54 = vsub.s32 3, %v179_v30 }
   0x6   :  { %v648_v27 = vld [vmem:[%s923_s4 + $0x4] ss:$8 sps:$4 sm:$0xff]   ;;  %v36_v31 = vld [vmem:[%s924_s1] sm:$0xf] }
   0x7   :  { %607 = vmatpush3.bf16.msra.mxu0 %v638_v3  ;;  %588 = vmatprep.mubr.msk.bf16.mxu1 %vm280_vm3, %v648_v27  ;;  %v187_v33 = vshrl.u32 %v36_v31, 16  ;;  %v176_v34 = vpack.i.b16 %v36_v31, %v36_v31  ;;  %v37_v58 = vld [vmem:[%s924_s1 + $0x4] sm:$0x1] }
   0x8   :  { %608 = vmatprep.subr.bf16.mxu0 %v663_v0  ;;  %65 = vperm.xlu0 %635, %v57_v7   ;;  %v250_v61 = vpack.i.b16 %v37_v58, %v37_v58 }
   0x9   :  { %v793_v35 = vrot.slane %v176_v34, %v180_v32  ;;  %v188_v36 = vpack.i.b16 %v187_v33, %v187_v33  ;;  %v799_v42 = vrot.slane %v176_v34, %v201_v38  ;;  %v808_v50 = vrot.slane %v176_v34, %v215_v46 }
   0xa   :  { %v816_v56 = vrot.slane %v176_v34, %v233_v54 }
   0xb   :  { %609 = vmatpush3.bf16.msra.mxu0 %v639_v4  ;;  %v796_v40 = vrot.slane %v188_v36, %v180_v32  ;;  %v804_v47 = vrot.slane %v188_v36, %v201_v38  ;;  %v811_v51 = vrot.slane %v188_v36, %v215_v46  ;;  %v822_v59 = vrot.slane %v188_v36, %v233_v54  ;;  %v646_v4 = vld [vmem:[%s923_s4] ss:$8 sps:$4 sm:$0xff]  }
   0xc   :  { %610 = vmatprep.subr.bf16.mxu0 %v663_v0 }
   0xf   :  { %611 = vmatpush3.bf16.msra.mxu0 %v640_v6 }
  0x10   :  { %612 = vmatprep.subr.bf16.mxu0 %v663_v0 }
  0x13   :  { %613 = vmatpush3.bf16.msra.mxu0 %v641_v8 }
  0x14   :  { %614 = vmatprep.subr.bf16.mxu0 %v663_v0 }
  0x17   :  { %615 = vmatpush3.bf16.msra.mxu0 %v642_v9 }
  0x18   :  { %616 = vmatprep.subr.bf16.mxu0 %v663_v0 }
  0x1b   :  { %617 = vmatpush3.bf16.msra.mxu0 %v643_v10 }
  0x1c   :  { %618 = vmatprep.subr.bf16.mxu0 %v663_v0  ;;  %v827_v0 = vrot.slane %v250_v61, %v180_v32 }
  0x1f   :  { %619 = vmatpush3.bf16.msra.mxu0 %v644_v11 }
  0x20   :  { %400 = vmatprep.subr.bf16.mxu0 %v665_v2 }
  0x22   :  { %621 = vmatmul.mubr.bf16.vlgmr.msra.gmra.mrb[0].mxu0 %v645_v12 }
  0x83   :  { %v61_v13 = vpop.permute.xlu0 %60 }
  0x87   :  { %v66_v17 = vpop.permute.xlu0 %65 }
  0xf5   :  { %v156_v14 = vpop.f32.mrb[0].mxu0 }
  0xf6   :  { %v157_v15 = vadd.f32 %v156_v14, %v61_v13  ;;  %v622_v16 = vpop.f32.mrb[1].mxu0 }
  0xf7   :  { %v159_v18 = vpop.f32.mrb[2].mxu0 }
  0xf8   :  { %v165_v19 = vmul.f32 0.01, %v157_v15  ;;  %v160_v20 = vadd.f32 %v159_v18, %v66_v17  ;;  %v623_v21 = vpop.f32.mrb[3].mxu0  ;;  %vm163_vm1 = vcmp.ge.f32.partialorder %v157_v15, 0.0  ;;  %v377_v18 = vld [vmem:[%s925_s7 + $0x8] sm:$0xff] }
  0xfa   :  { %vm164_vm2 = vcmp.ge.f32.partialorder %v160_v20, 0.0  ;;  %v166_v22 = vmul.f32 0.01, %v160_v20  ;;  %v766_v23 = vsel %vm163_vm1, %v157_v15, %v165_v19  ;;  %v376_v19 = vld [vmem:[%s925_s7] sm:$0xff] }
  0xfc   :  { %v768_v24 = vsel %vm164_vm2, %v160_v20, %v166_v22  ;;  %v649_v20 = vld [vmem:[%s926_s6 + $0x4] ss:$8 sps:$4 sm:$0xff]  }
  0xfd   :  { %v169_v25 = vpack.c.bf16 %v768_v24, %v766_v23  ;;  %591 = vmatprep.mubr.msk.bf16.mxu0 %vm280_vm3, %v649_v20 }
  0xff   :  { %195 = vrot.lane.b32.xlu0 %v169_v25, %s666_s0  ;;  %171 = vrot.lane.b32.xlu1 %v169_v25, %s667_s2  ;;  %v217_v52 = vmul.bf16 %v808_v50, %v169_v25 }
 0x103   :  { %218 = vrot.lane.b32.xlu0 %v169_v25, %s668_s14  ;;  %183 = vrot.lane.b32.xlu1 %v169_v25, %s669_s15 }
 0x107   :  { %236 = vrot.lane.b32.xlu0 %v169_v25, %s670_s16  ;;  %204 = vrot.lane.b32.xlu1 %v169_v25, %s671_s17 }
 0x10b   :  { %263 = vperm.xlu0 %635, %v259_v26   ;;  %227 = vrot.lane.b32.xlu1 %v169_v25, %s672_s20 }
 0x10f   :  { %245 = vrot.lane.b32.xlu1 %v169_v25, %s673_s21 }
 0x113   :  { %268 = vperm.xlu1 %636, %v260_v28  }
 0x171   :  { %v172_v37 = vpop.permute.xlu1 %171  ;;  %v196_v44 = vpop.permute.xlu0 %195 }
 0x172   :  { %v182_v39 = vmul.bf16 %v793_v35, %v172_v37  ;;  %v203_v45 = vmul.bf16 %v799_v42, %v196_v44 }
 0x174   :  { %285 = vmatpush1.bf16.msra.mxu1 %v182_v39 }
 0x175   :  { %v184_v41 = vpop.permute.xlu1 %183  ;;  %286 = vmatprep.subr.bf16.mxu1 %v665_v2  ;;  %v219_v53 = vpop.permute.xlu0 %218 }
 0x176   :  { %v194_v43 = vmul.bf16 %v796_v40, %v184_v41  ;;  %v226_v55 = vmul.bf16 %v811_v51, %v219_v53 }
 0x178   :  { %287 = vmatpush1.bf16.msra.mxu1 %v194_v43  ;;  %v651_v43 = vld [vmem:[%s926_s6] ss:$8 sps:$4 sm:$0xff]  }
 0x179   :  { %288 = vmatprep.subr.bf16.mxu1 %v665_v2  ;;  %v205_v48 = vpop.permute.xlu1 %204  ;;  %v237_v62 = vpop.permute.xlu0 %236 }
 0x17a   :  { %v212_v49 = vmul.bf16 %v804_v47, %v205_v48  ;;  %v244_v63 = vmul.bf16 %v822_v59, %v237_v62 }
 0x17c   :  { %289 = vmatpush1.bf16.msra.mxu1 %v203_v45 }
 0x17d   :  { %290 = vmatprep.subr.bf16.mxu1 %v665_v2  ;;  %v228_v57 = vpop.permute.xlu1 %227 }
 0x17e   :  { %v235_v60 = vmul.bf16 %v816_v56, %v228_v57 }
 0x180   :  { %291 = vmatpush1.bf16.msra.mxu1 %v212_v49 }
 0x181   :  { %292 = vmatprep.subr.bf16.mxu1 %v665_v2  ;;  %v246_v1 = vpop.permute.xlu1 %245 }
 0x182   :  { %v256_v3 = vmul.bf16 %v827_v0, %v246_v1  ;;  %v652_v1 = vld [vmem:[%s928_s8 + $0x4] ss:$8 sps:$4 sm:$0xff]  }
 0x184   :  { %293 = vmatpush1.bf16.msra.mxu1 %v217_v52 }
 0x185   :  { %294 = vmatprep.subr.bf16.mxu1 %v665_v2 }
 0x188   :  { %295 = vmatpush1.bf16.msra.mxu1 %v226_v55 }
 0x189   :  { %296 = vmatprep.subr.bf16.mxu1 %v665_v2 }
 0x18a   :  { %v264_v5 = vpop.permute.xlu0 %263 }
 0x18c   :  { %297 = vmatpush1.bf16.msra.mxu1 %v235_v60 }
 0x18d   :  { %298 = vmatprep.subr.bf16.mxu1 %v665_v2 }
 0x190   :  { %299 = vmatpush1.bf16.msra.mxu1 %v244_v63 }
 0x191   :  { %300 = vmatprep.subr.bf16.mxu1 %v665_v2 }
 0x192   :  { %v269_v7 = vpop.permute.xlu1 %268 }
 0x194   :  { %301 = vmatpush1.bf16.msra.mxu1 %v256_v3 }
 0x195   :  { %518 = vmatprep.subr.bf16.mxu1 %v665_v2 }
 0x197   :  { %317 = vmatmul.mubr.bf16.vlgmr.msra.gmra.mrb[0].mxu1 %v646_v4 }
 0x198   :  { %594 = vmatprep.mubr.msk.bf16.mxu1 %vm280_vm3, %v652_v1 }
 0x26a   :  { %v318_v6 = vpop.f32.mrb[0].mxu1 }
 0x26b   :  { %v319_v8 = vadd.f32 %v318_v6, %v264_v5  ;;  %v320_v9 = vpop.f32.mrb[1].mxu1 }
 0x26c   :  { %v321_v10 = vpop.f32.mrb[2].mxu1 }
 0x26d   :  { %v327_v11 = vmul.f32 0.01, %v319_v8  ;;  %v322_v12 = vadd.f32 %v321_v10, %v269_v7  ;;  %v323_v13 = vpop.f32.mrb[3].mxu1  ;;  %vm325_vm4 = vcmp.ge.f32.partialorder %v319_v8, 0.0 }
 0x26f   :  { %vm326_vm5 = vcmp.ge.f32.partialorder %v322_v12, 0.0  ;;  %v328_v14 = vmul.f32 0.01, %v322_v12  ;;  %v329_v15 = vsel %vm325_vm4, %v319_v8, %v327_v11 }
 0x271   :  { %v330_v16 = vsel %vm326_vm5, %v322_v12, %v328_v14 }
 0x272   :  { %v331_v17 = vpack.c.bf16 %v330_v16, %v329_v15 }
 0x274   :  { %338 = vrot.lane.b32.xlu1 %v331_v17, %s669_s15  ;;  %333 = vrot.lane.b32.xlu0 %v331_v17, %s667_s2  ;;  %v353_v31 = vmul.bf16 %v331_v17, %v808_v50 }
 0x278   :  { %348 = vrot.lane.b32.xlu1 %v331_v17, %s671_s17  ;;  %343 = vrot.lane.b32.xlu0 %v331_v17, %s666_s0 }
 0x27c   :  { %359 = vrot.lane.b32.xlu1 %v331_v17, %s672_s20  ;;  %354 = vrot.lane.b32.xlu0 %v331_v17, %s668_s14 }
 0x280   :  { %369 = vrot.lane.b32.xlu1 %v331_v17, %s673_s21  ;;  %364 = vrot.lane.b32.xlu0 %v331_v17, %s670_s16 }
 0x284   :  { %385 = vperm.xlu1 %636, %v377_v18   ;;  %380 = vperm.xlu0 %635, %v376_v19  }
 0x2e6   :  { %v334_v21 = vpop.permute.xlu0 %333  ;;  %v339_v25 = vpop.permute.xlu1 %338 }
 0x2e7   :  { %v337_v22 = vmul.bf16 %v334_v21, %v793_v35  ;;  %v342_v26 = vmul.bf16 %v339_v25, %v796_v40 }
 0x2e9   :  { %401 = vmatpush1.bf16.msra.mxu0 %v337_v22 }
 0x2ea   :  { %402 = vmatprep.subr.bf16.mxu0 %v665_v2  ;;  %v344_v27 = vpop.permute.xlu0 %343  ;;  %v349_v29 = vpop.permute.xlu1 %348 }
 0x2eb   :  { %v347_v28 = vmul.bf16 %v344_v27, %v799_v42  ;;  %v352_v30 = vmul.bf16 %v349_v29, %v804_v47 }
 0x2ed   :  { %403 = vmatpush1.bf16.msra.mxu0 %v342_v26 }
 0x2ee   :  { %404 = vmatprep.subr.bf16.mxu0 %v665_v2  ;;  %v355_v32 = vpop.permute.xlu0 %354  ;;  %v360_v34 = vpop.permute.xlu1 %359 }
 0x2ef   :  { %v358_v33 = vmul.bf16 %v355_v32, %v811_v51  ;;  %v363_v36 = vmul.bf16 %v360_v34, %v816_v56 }
 0x2f1   :  { %405 = vmatpush1.bf16.msra.mxu0 %v347_v28 }
 0x2f2   :  { %406 = vmatprep.subr.bf16.mxu0 %v665_v2  ;;  %v365_v37 = vpop.permute.xlu0 %364  ;;  %v370_v39 = vpop.permute.xlu1 %369 }
 0x2f3   :  { %v368_v38 = vmul.bf16 %v365_v37, %v822_v59  ;;  %v373_v41 = vmul.bf16 %v370_v39, %v827_v0 }
 0x2f5   :  { %407 = vmatpush1.bf16.msra.mxu0 %v352_v30 }
 0x2f6   :  { %408 = vmatprep.subr.bf16.mxu0 %v665_v2 }
 0x2f9   :  { %409 = vmatpush1.bf16.msra.mxu0 %v353_v31 }
 0x2fa   :  { %410 = vmatprep.subr.bf16.mxu0 %v665_v2 }
 0x2fd   :  { %411 = vmatpush1.bf16.msra.mxu0 %v358_v33 }
 0x2fe   :  { %412 = vmatprep.subr.bf16.mxu0 %v665_v2 }
 0x301   :  { %413 = vmatpush1.bf16.msra.mxu0 %v363_v36 }
 0x302   :  { %414 = vmatprep.subr.bf16.mxu0 %v665_v2 }
 0x303   :  { %v381_v44 = vpop.permute.xlu0 %380  ;;  %v386_v49 = vpop.permute.xlu1 %385 }
 0x305   :  { %415 = vmatpush1.bf16.msra.mxu0 %v368_v38 }
 0x306   :  { %416 = vmatprep.subr.bf16.mxu0 %v665_v2 }
 0x309   :  { %417 = vmatpush1.bf16.msra.mxu0 %v373_v41 }
 0x30c   :  { %433 = vmatmul.mubr.bf16.vlgmr.msra.gmra.mrb[4].mxu0 %v651_v43 }
 0x3df   :  { %v434_v45 = vpop.f32.mrb[4].mxu0 }
 0x3e0   :  { %v435_v46 = vadd.f32 %v434_v45, %v381_v44  ;;  %v436_v48 = vpop.f32.mrb[5].mxu0 }
 0x3e1   :  { %v437_v52 = vpop.f32.mrb[6].mxu0 }
 0x3e2   :  { %v441_v53 = vadd.f32 %v435_v46, %v766_v23  ;;  %v438_v54 = vadd.f32 %v437_v52, %v386_v49  ;;  %v439_v55 = vpop.f32.mrb[7].mxu0  ;;  %v495_v23 = vld [vmem:[%s927_s9 + $0x8] sm:$0xff] }
 0x3e4   :  { %v445_v57 = vmul.f32 0.01, %v441_v53  ;;  %v442_v58 = vadd.f32 %v438_v54, %v768_v24  ;;  %vm443_vm6 = vcmp.ge.f32.partialorder %v441_v53, 0.0  ;;  %v494_v24 = vld [vmem:[%s927_s9] sm:$0xff] }
 0x3e6   :  { %vm444_vm7 = vcmp.ge.f32.partialorder %v442_v58, 0.0  ;;  %v446_v60 = vmul.f32 0.01, %v442_v58  ;;  %v447_v61 = vsel %vm443_vm6, %v441_v53, %v445_v57 }
 0x3e8   :  { %v448_v62 = vsel %vm444_vm7, %v442_v58, %v446_v60 }
 0x3e9   :  { %v449_v63 = vpack.c.bf16 %v448_v62, %v447_v61 }
 0x3eb   :  { %456 = vrot.lane.b32.xlu1 %v449_v63, %s669_s15  ;;  %451 = vrot.lane.b32.xlu0 %v449_v63, %s667_s2 }
 0x3ef   :  { %466 = vrot.lane.b32.xlu1 %v449_v63, %s671_s17  ;;  %461 = vrot.lane.b32.xlu0 %v449_v63, %s666_s0 }
 0x3f3   :  { %477 = vrot.lane.b32.xlu1 %v449_v63, %s672_s20  ;;  %472 = vrot.lane.b32.xlu0 %v449_v63, %s668_s14 }
 0x3f7   :  { %487 = vrot.lane.b32.xlu1 %v449_v63, %s673_s21  ;;  %482 = vrot.lane.b32.xlu0 %v449_v63, %s670_s16 }
 0x3fb   :  { %503 = vperm.xlu1 %636, %v495_v23   ;;  %498 = vperm.xlu0 %635, %v494_v24  }
 0x45d   :  { %v452_v3 = vpop.permute.xlu0 %451  ;;  %v457_v5 = vpop.permute.xlu1 %456 }
 0x45e   :  { %v455_v4 = vmul.bf16 %v452_v3, %v793_v35  ;;  %v460_v6 = vmul.bf16 %v457_v5, %v796_v40  ;;  %v471_v35 = vmul.bf16 %v449_v63, %v808_v50 }
 0x460   :  { %519 = vmatpush1.bf16.msra.mxu1 %v455_v4 }
 0x461   :  { %520 = vmatprep.subr.bf16.mxu1 %v665_v2  ;;  %v462_v7 = vpop.permute.xlu0 %461  ;;  %v467_v9 = vpop.permute.xlu1 %466 }
 0x462   :  { %v465_v8 = vmul.bf16 %v462_v7, %v799_v42  ;;  %v470_v10 = vmul.bf16 %v467_v9, %v804_v47 }
 0x464   :  { %521 = vmatpush1.bf16.msra.mxu1 %v460_v6 }
 0x465   :  { %522 = vmatprep.subr.bf16.mxu1 %v665_v2  ;;  %v473_v11 = vpop.permute.xlu0 %472  ;;  %v478_v12 = vpop.permute.xlu1 %477 }
 0x466   :  { %v476_v40 = vmul.bf16 %v473_v11, %v811_v51  ;;  %v481_v42 = vmul.bf16 %v478_v12, %v816_v56  ;;  %v654_v51 = vld [vmem:[%s928_s8] ss:$8 sps:$4 sm:$0xff]  }
 0x468   :  { %523 = vmatpush1.bf16.msra.mxu1 %v465_v8 }
 0x469   :  { %524 = vmatprep.subr.bf16.mxu1 %v665_v2  ;;  %v483_v13 = vpop.permute.xlu0 %482  ;;  %v488_v14 = vpop.permute.xlu1 %487 }
 0x46a   :  { %v486_v47 = vmul.bf16 %v483_v13, %v822_v59  ;;  %v491_v50 = vmul.bf16 %v488_v14, %v827_v0 }
 0x46c   :  { %525 = vmatpush1.bf16.msra.mxu1 %v470_v10 }
 0x46d   :  { %526 = vmatprep.subr.bf16.mxu1 %v665_v2 }
 0x470   :  { %527 = vmatpush1.bf16.msra.mxu1 %v471_v35 }
 0x471   :  { %528 = vmatprep.subr.bf16.mxu1 %v665_v2 }
 0x474   :  { %529 = vmatpush1.bf16.msra.mxu1 %v476_v40 }
 0x475   :  { %530 = vmatprep.subr.bf16.mxu1 %v665_v2 }
 0x478   :  { %531 = vmatpush1.bf16.msra.mxu1 %v481_v42 }
 0x479   :  { %532 = vmatprep.subr.bf16.mxu1 %v665_v2 }
 0x47a   :  { %v499_v15 = vpop.permute.xlu0 %498  ;;  %v504_v18 = vpop.permute.xlu1 %503 }
 0x47c   :  { %533 = vmatpush1.bf16.msra.mxu1 %v486_v47 }
 0x47d   :  { %534 = vmatprep.subr.bf16.mxu1 %v665_v2 }
 0x480   :  { %535 = vmatpush1.bf16.msra.mxu1 %v491_v50 }
 0x483   :  { %551 = vmatmul.mubr.bf16.vlgmr.msra.gmra.mrb[4].mxu1 %v654_v51 }
 0x556   :  { %v552_v56 = vpop.f32.mrb[4].mxu1 }
 0x557   :  { %v553_v16 = vadd.f32 %v552_v56, %v499_v15  ;;  %v554_v17 = vpop.f32.mrb[5].mxu1 }
 0x558   :  { %v555_v19 = vpop.f32.mrb[6].mxu1 }
 0x559   :  { %v559_v20 = vsub.f32 0.0, %v553_v16  ;;  %v556_v59 = vadd.f32 %v555_v19, %v504_v18  ;;  %v557_v21 = vpop.f32.mrb[7].mxu1 }
 0x55b   :  { %v561_v22 = vmul.f32 1.442695, %v559_v20  ;;  %v560_v25 = vsub.f32 0.0, %v556_v59 }
 0x55d   :  { %655 = vpow2.f32 %v561_v22  ;;  %v563_v2 = vmul.f32 1.442695, %v560_v25 }
 0x55f   :  { %657 = vpow2.f32 %v563_v2 }
 0x567   :  { %v656_v0 = vpop.eup %655 }
 0x568   :  { %v565_v26 = vadd.f32 1.0, %v656_v0 }
 0x569   :  { %v658_v27 = vpop.eup %657 }
 0x56a   :  { %659 = vrcp.f32 %v565_v26  ;;  %v566_v28 = vadd.f32 1.0, %v658_v27 }
 0x56c   :  { %661 = vrcp.f32 %v566_v28 }
 0x574   :  { %v660_v29 = vpop.eup %659 }
 0x575   :  { %571 = vst [vmem:[%s929_s10] sm:$0xff] %v660_v29 }
 0x576   :  { %v662_v30 = vpop.eup %661 }
 0x577   :  { %572 = vst [vmem:[%s929_s10 + $0x8] sm:$0xff] %v662_v30 }

</bundles_post_ra>
